<compile_context>
chip_gen: v7x
topology: tpu7x:2x2x1
jax: 0.10.0
libtpu: 0.0.40
codegen_flags: <defaults>
</compile_context>

<pallas_src>
import functools
import math

import jax
import jax.numpy as jnp
import numpy as np
from jax.experimental import pallas as pl
from jax.experimental.pallas import tpu as pltpu

MATMUL_DTYPE = jnp.bfloat16     # MXU input dtype (f32 accumulation everywhere)
NEG_INF = jnp.float32(-1e30)    # masked_fill(-inf) equivalent (NaN-safe)


# ----------------------------------------------------------------------------- kernel
def _layer_norm(x, g, b, eps=1e-6):
    mu = jnp.mean(x, axis=-1, keepdims=True)
    var = jnp.mean((x - mu) ** 2, axis=-1, keepdims=True)
    return (x - mu) * jax.lax.rsqrt(var + eps) * g + b


def encoder_stack_kernel(x_ref, bias_ref,
                         ln_g_ref, ln_b_ref,
                         wq_ref, wk_ref, wv_ref, wo_ref,
                         w1_ref, b1_ref, w2_ref, b2_ref,
                         fg_ref, fb_ref,
                         out_ref, *, n_head, n_layer):
    """Whole encoder stack for one batch tile (grid axis = batch tiles)."""
    BT, S, H = x_ref.shape
    dh = H // n_head
    M = BT * S                      # rows fed to every dense matmul
    nb = n_head * BT                # fused (head, example) batch dim for attention
    cd = MATMUL_DTYPE

    # Flatten the batch tile: all projections / FFN matmuls see (BT*S, H) rows.
    x = x_ref[...].reshape(M, H)                       # f32 activations, VMEM-resident

    # Additive key-padding bias, hoisted out of the unrolled layer loop.
    # Index layout is head-major then example: n = h * BT + b.
    bias_bt = jnp.broadcast_to(bias_ref[...], (BT, S, S))      # (BT,1,S) -> (BT,S,S)
    bias_nb = jnp.tile(bias_bt, (n_head, 1, 1))                # (n_head*BT, S, S)

    def to_heads(t):        # (M, H) -> (n_head*BT, S, dh), head-major
        t = jnp.transpose(t.reshape(M, n_head, dh), (1, 0, 2))  # (nH, M, dh)
        return t.reshape(nb, S, dh)

    def from_heads(t):      # (n_head*BT, S, dh) -> (M, H)
        t = jnp.transpose(t.reshape(n_head, M, dh), (1, 0, 2))  # (M, nH, dh)
        return t.reshape(M, H)

    for l in range(n_layer):            # static unroll (n_layer is small)
        g = ln_g_ref[l]                 # (1, H) — the SAME LayerNorm is applied before
        b = ln_b_ref[l]                 #           both sublayers (matches PyTorch)

        # ---- self-attention sublayer: x + MHA(LN(x)) -------------------------------
        xn = _layer_norm(x, g, b).astype(cd)        # one f32->bf16 cast, (M, H)
        # Three separate dots: no lane-unaligned slices of a fused (M,3H) output.
        # 1/sqrt(dh) is already folded into wq at parameter-construction time.
        q = jnp.dot(xn, wq_ref[l], preferred_element_type=jnp.float32)
        k = jnp.dot(xn, wk_ref[l], preferred_element_type=jnp.float32)
        v = jnp.dot(xn, wv_ref[l], preferred_element_type=jnp.float32)

        qh = to_heads(q.astype(cd))                 # (nb, S, dh)
        kh = to_heads(k.astype(cd))
        vh = to_heads(v.astype(cd))

        s = jnp.einsum('nqd,nkd->nqk', qh, kh,
                       preferred_element_type=jnp.float32)       # (nb, S, S)
        s = s + bias_nb                                           # mask padded keys
        s = s - jnp.max(s, axis=-1, keepdims=True)
        probs = jnp.exp(s)
        probs = probs * pl.reciprocal(jnp.sum(probs, axis=-1, keepdims=True),
                                      approx=True)
        o = jnp.einsum('nqk,nkd->nqd', probs.astype(cd), vh,
                       preferred_element_type=jnp.float32)        # (nb, S, dh)
        attn = jnp.dot(from_heads(o.astype(cd)), wo_ref[l],
                       preferred_element_type=jnp.float32)        # (M, H)
        x = x + attn

        # ---- position-wise FFN sublayer: x + FFN(LN(x)) (same LN params) -----------
        xn2 = _layer_norm(x, g, b).astype(cd)
        h1 = jnp.dot(xn2, w1_ref[l], preferred_element_type=jnp.float32) + b1_ref[l]
        h1 = jnp.maximum(h1, 0.0)
        ff = jnp.dot(h1.astype(cd), w2_ref[l],
                     preferred_element_type=jnp.float32) + b2_ref[l]
        x = x + ff

    # ---- final LayerNorm -------------------------------------------------------------
    x = _layer_norm(x, fg_ref[...], fb_ref[...])
    out_ref[...] = x.reshape(BT, S, H).astype(out_ref.dtype)


# ----------------------------------------------------------------------------- wrapper
def encoder_forward(source, params, p):
    B, S = source.shape
    H = p.hidden_dim
    F = p.feed_forward_dim
    L = p.n_layer

    # Embedding gathers / position ids / mask building are plain-JAX glue.
    # sqrt(H) embedding scale is already folded into the token table.
    source_pos = create_position_vector(source, p.pad_idx)
    x = params['tok'][source] + params['pos'][source_pos]            # (B, S, H) f32
    # additive key-padding bias, (B, 1, S): 0 for real tokens, -1e30 for pads
    bias = jnp.where(source == p.pad_idx, NEG_INF, jnp.float32(0.0))[:, None, :]

    # Batch tile: >=2 grid steps so v7x's two TensorCores both get work; each step
    # flattens its tile to (BT*S, H) rows for the MXU.
    BT = max(1, (B + 1) // 2)
    assert B % BT == 0, "toy wrapper assumes the batch splits evenly into tiles"
    num_tiles = B // BT

    args = (
        x, bias,
        params['ln_g'], params['ln_b'],
        params['wq'], params['wk'], params['wv'], params['wo'],
        params['w1'], params['b1'], params['w2'], params['b2'],
        params['final_g'], params['final_b'],
    )

    def weight_spec(a):
        # Whole-array block with a constant block index: fetched once across the grid.
        # Single-buffered — never-changing weights don't need a second VMEM copy.
        return pl.BlockSpec(a.shape, lambda bi, n=a.ndim: (0,) * n,
                            pipeline_mode=pl.Buffered(1))

    in_specs = [
        pl.BlockSpec((BT, S, H), lambda bi: (bi, 0, 0)),              # x (batch tile)
        pl.BlockSpec((BT, 1, S), lambda bi: (bi, 0, 0)),              # key-padding bias
    ] + [weight_spec(a) for a in args[2:]]

    # Advisory cost hint so XLA overlaps the embedding gather / mask build with the call.
    flops = L * (8 * B * S * H * H + 4 * B * S * H * F + 4 * B * S * S * H)
    cost = pl.CostEstimate(
        flops=int(flops),
        transcendentals=int(L * B * p.n_head * S * S),
        bytes_accessed=int(sum(a.size * a.dtype.itemsize for a in args)
                           + B * S * H * 4))

    kernel = functools.partial(encoder_stack_kernel,
                               n_head=p.n_head, n_layer=p.n_layer)
    return pl.pallas_call(
        kernel,
        grid=(num_tiles,),
        in_specs=in_specs,
        out_specs=pl.BlockSpec((BT, S, H), lambda bi: (bi, 0, 0)),
        out_shape=jax.ShapeDtypeStruct((B, S, H), jnp.float32),
        compiler_params=pltpu.CompilerParams(
            dimension_semantics=("parallel",),
            vmem_limit_bytes=32 * 1024 * 1024),
        cost_estimate=cost,
    )(*args)


# ----------------------------------------------------------------------------- glue
def create_positional_encoding(max_len, hidden_dim):
    pos = np.arange(max_len)[:, None].astype(np.float64)
    i = np.arange(hidden_dim)[None, :]
    angle = pos / np.power(10000.0, 2 * (i // 2) / hidden_dim)
    table = np.zeros((max_len, hidden_dim), dtype=np.float32)
    table[:, 0::2] = np.sin(angle[:, 0::2])
    table[:, 1::2] = np.cos(angle[:, 1::2])
    table[0] = 0.0                                   # row 0 reserved for pad position
    return jnp.asarray(table)


def create_position_vector(source, pad_idx):
    _, S = source.shape
    pos = jnp.arange(1, S + 1, dtype=jnp.int32)[None, :]
    return jnp.where(source == pad_idx, 0, pos)


class Params:
    input_dim = 50
    hidden_dim = 32
    n_head = 4
    feed_forward_dim = 64
    n_layer = 2
    max_len = 16
    pad_idx = 0
    dropout = 0.0   # TODO(synk): dropout layers are identity (inference mode)


def init_params(key, p):
    H, F, L = p.hidden_dim, p.feed_forward_dim, p.n_layer
    dh = H // p.n_head
    assert H % p.n_head == 0
    keys = jax.random.split(key, 1 + L)

    tok = jax.random.normal(keys[0], (p.input_dim, H), jnp.float32) * (H ** -0.5)
    tok = tok.at[p.pad_idx].set(0.0)                 # padding_idx row zeroed
    tok = tok * (H ** 0.5)                           # embedding_scale folded in

    def nrm(k, shape, std):
        return jax.random.normal(k, shape, jnp.float32) * std

    wq, wk, wv, wo, w1, w2 = [], [], [], [], [], []
    for l in range(L):
        lk = jax.random.split(keys[1 + l], 6)
        std_qkv = math.sqrt(2.0 / (H + dh))
        # attention scale 1/sqrt(dh) folded into the Q projection (free at init)
        wq.append(nrm(lk[0], (H, H), std_qkv) * (dh ** -0.5))
        wk.append(nrm(lk[1], (H, H), std_qkv))
        wv.append(nrm(lk[2], (H, H), std_qkv))
        wo.append(nrm(lk[3], (H, H), math.sqrt(2.0 / (2 * H))))
        w1.append(nrm(lk[4], (H, F), math.sqrt(2.0 / H)))
        w2.append(nrm(lk[5], (F, H), math.sqrt(2.0 / F)))

    # Dense matmul weights stored in the MXU input dtype; LN params / biases stay f32.
    return dict(
        tok=tok,
        pos=create_positional_encoding(p.max_len + 1, H),
        ln_g=jnp.ones((L, 1, H), jnp.float32),
        ln_b=jnp.zeros((L, 1, H), jnp.float32),
        wq=jnp.stack(wq).astype(MATMUL_DTYPE),
        wk=jnp.stack(wk).astype(MATMUL_DTYPE),
        wv=jnp.stack(wv).astype(MATMUL_DTYPE),
        wo=jnp.stack(wo).astype(MATMUL_DTYPE),
        w1=jnp.stack(w1).astype(MATMUL_DTYPE),
        b1=jnp.zeros((L, 1, F), jnp.float32),
        w2=jnp.stack(w2).astype(MATMUL_DTYPE),
        b2=jnp.zeros((L, 1, H), jnp.float32),
        final_g=jnp.ones((1, H), jnp.float32),
        final_b=jnp.zeros((1, H), jnp.float32),
    )


# ----------------------------------------------------------------------------- main
if __name__ == "__main__":
    p = Params()
    B, S = 2, 8

    key = jax.random.PRNGKey(0)
    k_par, k_src = jax.random.split(key)
    params = init_params(k_par, p)

    source = jax.random.randint(k_src, (B, S), 1, p.input_dim, dtype=jnp.int32)
    source = source.at[0, 6:].set(p.pad_idx)         # exercise key-padding mask
    source = source.at[1, 5:].set(p.pad_idx)

    fwd = jax.jit(lambda src: encoder_forward(src, params, p))
    out = jax.block_until_ready(fwd(source))

    assert out.shape == (B, S, p.hidden_dim)
    assert bool(jnp.all(jnp.isfinite(out)))
    print("KERNEL_OK")
</pallas_src>

<mosaic_0001>
module attributes {stable_mosaic.version = 11 : i64} {
  func.func @encoder_stack_kernel(%arg0: i32, %arg1: memref<1x8x32xf32, #tpu.memory_space<vmem>>, %arg2: memref<1x1x8xf32, #tpu.memory_space<vmem>>, %arg3: memref<2x1x32xf32, #tpu.memory_space<vmem>>, %arg4: memref<2x1x32xf32, #tpu.memory_space<vmem>>, %arg5: memref<2x32x32xbf16, #tpu.memory_space<vmem>>, %arg6: memref<2x32x32xbf16, #tpu.memory_space<vmem>>, %arg7: memref<2x32x32xbf16, #tpu.memory_space<vmem>>, %arg8: memref<2x32x32xbf16, #tpu.memory_space<vmem>>, %arg9: memref<2x32x64xbf16, #tpu.memory_space<vmem>>, %arg10: memref<2x1x64xf32, #tpu.memory_space<vmem>>, %arg11: memref<2x64x32xbf16, #tpu.memory_space<vmem>>, %arg12: memref<2x1x32xf32, #tpu.memory_space<vmem>>, %arg13: memref<1x32xf32, #tpu.memory_space<vmem>>, %arg14: memref<1x32xf32, #tpu.memory_space<vmem>>, %arg15: memref<1x8x32xf32, #tpu.memory_space<vmem>>) attributes {dimension_semantics = [#tpu.dimension_semantics<parallel>], iteration_bounds = array<i64: 2>, scalar_prefetch = 0 : i64, scratch_operands = 0 : i64, tpu.core_type = #tpu.core_type<tc>, window_params = [{transform_indices = @transform_0, window_bounds = array<i64: 1, 8, 32>}, {transform_indices = @transform_1, window_bounds = array<i64: 1, 1, 8>}, {pipeline_mode = #tpu.pipeline_mode<synchronous>, transform_indices = @transform_2, window_bounds = array<i64: 2, 1, 32>}, {pipeline_mode = #tpu.pipeline_mode<synchronous>, transform_indices = @transform_3, window_bounds = array<i64: 2, 1, 32>}, {pipeline_mode = #tpu.pipeline_mode<synchronous>, transform_indices = @transform_4, window_bounds = array<i64: 2, 32, 32>}, {pipeline_mode = #tpu.pipeline_mode<synchronous>, transform_indices = @transform_5, window_bounds = array<i64: 2, 32, 32>}, {pipeline_mode = #tpu.pipeline_mode<synchronous>, transform_indices = @transform_6, window_bounds = array<i64: 2, 32, 32>}, {pipeline_mode = #tpu.pipeline_mode<synchronous>, transform_indices = @transform_7, window_bounds = array<i64: 2, 32, 32>}, {pipeline_mode = #tpu.pipeline_mode<synchronous>, transform_indices = @transform_8, window_bounds = array<i64: 2, 32, 64>}, {pipeline_mode = #tpu.pipeline_mode<synchronous>, transform_indices = @transform_9, window_bounds = array<i64: 2, 1, 64>}, {pipeline_mode = #tpu.pipeline_mode<synchronous>, transform_indices = @transform_10, window_bounds = array<i64: 2, 64, 32>}, {pipeline_mode = #tpu.pipeline_mode<synchronous>, transform_indices = @transform_11, window_bounds = array<i64: 2, 1, 32>}, {pipeline_mode = #tpu.pipeline_mode<synchronous>, transform_indices = @transform_12, window_bounds = array<i64: 1, 32>}, {pipeline_mode = #tpu.pipeline_mode<synchronous>, transform_indices = @transform_13, window_bounds = array<i64: 1, 32>}, {transform_indices = @transform_14, window_bounds = array<i64: 1, 8, 32>}]} {
    %c0 = arith.constant 0 : index
    %c0_0 = arith.constant 0 : index
    %c0_1 = arith.constant 0 : index
    %0 = vector.load %arg1[%c0, %c0_0, %c0_1] : memref<1x8x32xf32, #tpu.memory_space<vmem>>, vector<1x8x32xf32>
    %1 = vector.shape_cast %0 : vector<1x8x32xf32> to vector<8x32xf32>
    %c0_2 = arith.constant 0 : index
    %c0_3 = arith.constant 0 : index
    %c0_4 = arith.constant 0 : index
    %2 = vector.load %arg2[%c0_2, %c0_3, %c0_4] : memref<1x1x8xf32, #tpu.memory_space<vmem>>, vector<1x1x8xf32>
    %3 = vector.shape_cast %2 : vector<1x1x8xf32> to vector<1x1x8xf32>
    %4 = vector.broadcast %3 : vector<1x1x8xf32> to vector<1x8x8xf32>
    %5 = tpu.concatenate %4, %4, %4, %4 in 0 : vector<1x8x8xf32>, vector<1x8x8xf32>, vector<1x8x8xf32>, vector<1x8x8xf32> -> vector<4x8x8xf32>
    %c0_5 = arith.constant 0 : index
    %c0_6 = arith.constant 0 : index
    %c0_7 = arith.constant 0 : index
    %6 = vector.load %arg3[%c0_5, %c0_6, %c0_7] : memref<2x1x32xf32, #tpu.memory_space<vmem>>, vector<1x1x32xf32>
    %7 = vector.shape_cast %6 : vector<1x1x32xf32> to vector<1x32xf32>
    %c0_8 = arith.constant 0 : index
    %c0_9 = arith.constant 0 : index
    %c0_10 = arith.constant 0 : index
    %8 = vector.load %arg4[%c0_8, %c0_9, %c0_10] : memref<2x1x32xf32, #tpu.memory_space<vmem>>, vector<1x1x32xf32>
    %9 = vector.shape_cast %8 : vector<1x1x32xf32> to vector<1x32xf32>
    %cst = arith.constant dense<0.000000e+00> : vector<8xf32>
    %10 = vector.multi_reduction <add>, %1, %cst [1] : vector<8x32xf32> to vector<8xf32>
    %11 = vector.shape_cast %10 : vector<8xf32> to vector<8x1xf32>
    %cst_11 = arith.constant 3.200000e+01 : f32
    %12 = vector.broadcast %cst_11 : f32 to vector<8x1xf32>
    %13 = arith.divf %11, %12 : vector<8x1xf32>
    %14 = vector.broadcast %13 : vector<8x1xf32> to vector<8x32xf32>
    %15 = arith.subf %1, %14 : vector<8x32xf32>
    %16 = arith.mulf %15, %15 : vector<8x32xf32>
    %cst_12 = arith.constant dense<0.000000e+00> : vector<8xf32>
    %17 = vector.multi_reduction <add>, %16, %cst_12 [1] : vector<8x32xf32> to vector<8xf32>
    %18 = vector.shape_cast %17 : vector<8xf32> to vector<8x1xf32>
    %cst_13 = arith.constant 3.200000e+01 : f32
    %19 = vector.broadcast %cst_13 : f32 to vector<8x1xf32>
    %20 = arith.divf %18, %19 : vector<8x1xf32>
    %21 = vector.broadcast %13 : vector<8x1xf32> to vector<8x32xf32>
    %22 = arith.subf %1, %21 : vector<8x32xf32>
    %cst_14 = arith.constant 9.99999997E-7 : f32
    %23 = vector.broadcast %cst_14 : f32 to vector<8x1xf32>
    %24 = arith.addf %20, %23 : vector<8x1xf32>
    %25 = math.rsqrt %24 : vector<8x1xf32>
    %26 = vector.broadcast %25 : vector<8x1xf32> to vector<8x32xf32>
    %27 = arith.mulf %22, %26 : vector<8x32xf32>
    %28 = vector.broadcast %7 : vector<1x32xf32> to vector<8x32xf32>
    %29 = arith.mulf %27, %28 : vector<8x32xf32>
    %30 = vector.broadcast %9 : vector<1x32xf32> to vector<8x32xf32>
    %31 = arith.addf %29, %30 : vector<8x32xf32>
    %32 = arith.truncf %31 : vector<8x32xf32> to vector<8x32xbf16>
    %c0_15 = arith.constant 0 : index
    %c0_16 = arith.constant 0 : index
    %c0_17 = arith.constant 0 : index
    %33 = vector.load %arg5[%c0_15, %c0_16, %c0_17] : memref<2x32x32xbf16, #tpu.memory_space<vmem>>, vector<1x32x32xbf16>
    %34 = vector.shape_cast %33 : vector<1x32x32xbf16> to vector<32x32xbf16>
    %cst_18 = arith.constant dense<0.000000e+00> : vector<8x32xf32>
    %35 = tpu.matmul %32, %34, %cst_18 {dimension_numbers = #tpu.dot_dimension_numbers<[1], [0], [0], [1], [0, 0, 1, 1], [], []>} : vector<8x32xbf16>, vector<32x32xbf16>, vector<8x32xf32> -> vector<8x32xf32>
    %c0_19 = arith.constant 0 : index
    %c0_20 = arith.constant 0 : index
    %c0_21 = arith.constant 0 : index
    %36 = vector.load %arg6[%c0_19, %c0_20, %c0_21] : memref<2x32x32xbf16, #tpu.memory_space<vmem>>, vector<1x32x32xbf16>
    %37 = vector.shape_cast %36 : vector<1x32x32xbf16> to vector<32x32xbf16>
    %cst_22 = arith.constant dense<0.000000e+00> : vector<8x32xf32>
    %38 = tpu.matmul %32, %37, %cst_22 {dimension_numbers = #tpu.dot_dimension_numbers<[1], [0], [0], [1], [0, 0, 1, 1], [], []>} : vector<8x32xbf16>, vector<32x32xbf16>, vector<8x32xf32> -> vector<8x32xf32>
    %c0_23 = arith.constant 0 : index
    %c0_24 = arith.constant 0 : index
    %c0_25 = arith.constant 0 : index
    %39 = vector.load %arg7[%c0_23, %c0_24, %c0_25] : memref<2x32x32xbf16, #tpu.memory_space<vmem>>, vector<1x32x32xbf16>
    %40 = vector.shape_cast %39 : vector<1x32x32xbf16> to vector<32x32xbf16>
    %cst_26 = arith.constant dense<0.000000e+00> : vector<8x32xf32>
    %41 = tpu.matmul %32, %40, %cst_26 {dimension_numbers = #tpu.dot_dimension_numbers<[1], [0], [0], [1], [0, 0, 1, 1], [], []>} : vector<8x32xbf16>, vector<32x32xbf16>, vector<8x32xf32> -> vector<8x32xf32>
    %42 = arith.truncf %35 : vector<8x32xf32> to vector<8x32xbf16>
    %43 = vector.shape_cast %42 : vector<8x32xbf16> to vector<8x4x8xbf16>
    %44 = tpu.transpose %43, [1, 0, 2] : vector<8x4x8xbf16> -> vector<4x8x8xbf16>
    %45 = arith.truncf %38 : vector<8x32xf32> to vector<8x32xbf16>
    %46 = vector.shape_cast %45 : vector<8x32xbf16> to vector<8x4x8xbf16>
    %47 = tpu.transpose %46, [1, 0, 2] : vector<8x4x8xbf16> -> vector<4x8x8xbf16>
    %48 = arith.truncf %41 : vector<8x32xf32> to vector<8x32xbf16>
    %49 = vector.shape_cast %48 : vector<8x32xbf16> to vector<8x4x8xbf16>
    %50 = tpu.transpose %49, [1, 0, 2] : vector<8x4x8xbf16> -> vector<4x8x8xbf16>
    "tpu.trace_start"() <{level = 10 : i32, message = "nqd,nkd->nqk"}> : () -> ()
    %cst_27 = arith.constant dense<0.000000e+00> : vector<4x8x8xf32>
    %51 = tpu.matmul %44, %47, %cst_27 {dimension_numbers = #tpu.dot_dimension_numbers<[2], [2], [1], [1], [0, 0, 0, 1, 1, 1], [0], [0]>} : vector<4x8x8xbf16>, vector<4x8x8xbf16>, vector<4x8x8xf32> -> vector<4x8x8xf32>
    "tpu.trace_stop"() : () -> ()
    %52 = arith.addf %51, %5 : vector<4x8x8xf32>
    %cst_28 = arith.constant dense<0xFF800000> : vector<4x8xf32>
    %53 = vector.multi_reduction <maximumf>, %52, %cst_28 [2] : vector<4x8x8xf32> to vector<4x8xf32>
    %54 = vector.shape_cast %53 : vector<4x8xf32> to vector<4x8x1xf32>
    %55 = vector.broadcast %54 : vector<4x8x1xf32> to vector<4x8x8xf32>
    %56 = arith.subf %52, %55 : vector<4x8x8xf32>
    %57 = math.exp %56 : vector<4x8x8xf32>
    %cst_29 = arith.constant dense<0.000000e+00> : vector<4x8xf32>
    %58 = vector.multi_reduction <add>, %57, %cst_29 [2] : vector<4x8x8xf32> to vector<4x8xf32>
    %59 = vector.shape_cast %58 : vector<4x8xf32> to vector<4x8x1xf32>
    %60 = tpu.reciprocal %59 {approx = true} : vector<4x8x1xf32> -> vector<4x8x1xf32>
    %61 = vector.broadcast %60 : vector<4x8x1xf32> to vector<4x8x8xf32>
    %62 = arith.mulf %57, %61 : vector<4x8x8xf32>
    %63 = arith.truncf %62 : vector<4x8x8xf32> to vector<4x8x8xbf16>
    "tpu.trace_start"() <{level = 10 : i32, message = "nqk,nkd->nqd"}> : () -> ()
    %cst_30 = arith.constant dense<0.000000e+00> : vector<4x8x8xf32>
    %64 = tpu.matmul %63, %50, %cst_30 {dimension_numbers = #tpu.dot_dimension_numbers<[2], [1], [1], [2], [0, 0, 0, 1, 1, 2], [0], [0]>} : vector<4x8x8xbf16>, vector<4x8x8xbf16>, vector<4x8x8xf32> -> vector<4x8x8xf32>
    "tpu.trace_stop"() : () -> ()
    %65 = arith.truncf %64 : vector<4x8x8xf32> to vector<4x8x8xbf16>
    %66 = tpu.transpose %65, [1, 0, 2] : vector<4x8x8xbf16> -> vector<8x4x8xbf16>
    %67 = vector.shape_cast %66 : vector<8x4x8xbf16> to vector<8x32xbf16>
    %c0_31 = arith.constant 0 : index
    %c0_32 = arith.constant 0 : index
    %c0_33 = arith.constant 0 : index
    %68 = vector.load %arg8[%c0_31, %c0_32, %c0_33] : memref<2x32x32xbf16, #tpu.memory_space<vmem>>, vector<1x32x32xbf16>
    %69 = vector.shape_cast %68 : vector<1x32x32xbf16> to vector<32x32xbf16>
    %cst_34 = arith.constant dense<0.000000e+00> : vector<8x32xf32>
    %70 = tpu.matmul %67, %69, %cst_34 {dimension_numbers = #tpu.dot_dimension_numbers<[1], [0], [0], [1], [0, 0, 1, 1], [], []>} : vector<8x32xbf16>, vector<32x32xbf16>, vector<8x32xf32> -> vector<8x32xf32>
    %71 = arith.addf %1, %70 : vector<8x32xf32>
    %cst_35 = arith.constant dense<0.000000e+00> : vector<8xf32>
    %72 = vector.multi_reduction <add>, %71, %cst_35 [1] : vector<8x32xf32> to vector<8xf32>
    %73 = vector.shape_cast %72 : vector<8xf32> to vector<8x1xf32>
    %cst_36 = arith.constant 3.200000e+01 : f32
    %74 = vector.broadcast %cst_36 : f32 to vector<8x1xf32>
    %75 = arith.divf %73, %74 : vector<8x1xf32>
    %76 = vector.broadcast %75 : vector<8x1xf32> to vector<8x32xf32>
    %77 = arith.subf %71, %76 : vector<8x32xf32>
    %78 = arith.mulf %77, %77 : vector<8x32xf32>
    %cst_37 = arith.constant dense<0.000000e+00> : vector<8xf32>
    %79 = vector.multi_reduction <add>, %78, %cst_37 [1] : vector<8x32xf32> to vector<8xf32>
    %80 = vector.shape_cast %79 : vector<8xf32> to vector<8x1xf32>
    %cst_38 = arith.constant 3.200000e+01 : f32
    %81 = vector.broadcast %cst_38 : f32 to vector<8x1xf32>
    %82 = arith.divf %80, %81 : vector<8x1xf32>
    %83 = vector.broadcast %75 : vector<8x1xf32> to vector<8x32xf32>
    %84 = arith.subf %71, %83 : vector<8x32xf32>
    %cst_39 = arith.constant 9.99999997E-7 : f32
    %85 = vector.broadcast %cst_39 : f32 to vector<8x1xf32>
    %86 = arith.addf %82, %85 : vector<8x1xf32>
    %87 = math.rsqrt %86 : vector<8x1xf32>
    %88 = vector.broadcast %87 : vector<8x1xf32> to vector<8x32xf32>
    %89 = arith.mulf %84, %88 : vector<8x32xf32>
    %90 = vector.broadcast %7 : vector<1x32xf32> to vector<8x32xf32>
    %91 = arith.mulf %89, %90 : vector<8x32xf32>
    %92 = vector.broadcast %9 : vector<1x32xf32> to vector<8x32xf32>
    %93 = arith.addf %91, %92 : vector<8x32xf32>
    %94 = arith.truncf %93 : vector<8x32xf32> to vector<8x32xbf16>
    %c0_40 = arith.constant 0 : index
    %c0_41 = arith.constant 0 : index
    %c0_42 = arith.constant 0 : index
    %95 = vector.load %arg9[%c0_40, %c0_41, %c0_42] : memref<2x32x64xbf16, #tpu.memory_space<vmem>>, vector<1x32x64xbf16>
    %96 = vector.shape_cast %95 : vector<1x32x64xbf16> to vector<32x64xbf16>
    %cst_43 = arith.constant dense<0.000000e+00> : vector<8x64xf32>
    %97 = tpu.matmul %94, %96, %cst_43 {dimension_numbers = #tpu.dot_dimension_numbers<[1], [0], [0], [1], [0, 0, 1, 1], [], []>} : vector<8x32xbf16>, vector<32x64xbf16>, vector<8x64xf32> -> vector<8x64xf32>
    %c0_44 = arith.constant 0 : index
    %c0_45 = arith.constant 0 : index
    %c0_46 = arith.constant 0 : index
    %98 = vector.load %arg10[%c0_44, %c0_45, %c0_46] : memref<2x1x64xf32, #tpu.memory_space<vmem>>, vector<1x1x64xf32>
    %99 = vector.shape_cast %98 : vector<1x1x64xf32> to vector<1x64xf32>
    %100 = vector.broadcast %99 : vector<1x64xf32> to vector<8x64xf32>
    %101 = arith.addf %97, %100 : vector<8x64xf32>
    %cst_47 = arith.constant 0.000000e+00 : f32
    %102 = vector.broadcast %cst_47 : f32 to vector<8x64xf32>
    %103 = arith.maximumf %101, %102 : vector<8x64xf32>
    %104 = arith.truncf %103 : vector<8x64xf32> to vector<8x64xbf16>
    %c0_48 = arith.constant 0 : index
    %c0_49 = arith.constant 0 : index
    %c0_50 = arith.constant 0 : index
    %105 = vector.load %arg11[%c0_48, %c0_49, %c0_50] : memref<2x64x32xbf16, #tpu.memory_space<vmem>>, vector<1x64x32xbf16>
    %106 = vector.shape_cast %105 : vector<1x64x32xbf16> to vector<64x32xbf16>
    %cst_51 = arith.constant dense<0.000000e+00> : vector<8x32xf32>
    %107 = tpu.matmul %104, %106, %cst_51 {dimension_numbers = #tpu.dot_dimension_numbers<[1], [0], [0], [1], [0, 0, 1, 1], [], []>} : vector<8x64xbf16>, vector<64x32xbf16>, vector<8x32xf32> -> vector<8x32xf32>
    %c0_52 = arith.constant 0 : index
    %c0_53 = arith.constant 0 : index
    %c0_54 = arith.constant 0 : index
    %108 = vector.load %arg12[%c0_52, %c0_53, %c0_54] : memref<2x1x32xf32, #tpu.memory_space<vmem>>, vector<1x1x32xf32>
    %109 = vector.shape_cast %108 : vector<1x1x32xf32> to vector<1x32xf32>
    %110 = vector.broadcast %109 : vector<1x32xf32> to vector<8x32xf32>
    %111 = arith.addf %107, %110 : vector<8x32xf32>
    %112 = arith.addf %71, %111 : vector<8x32xf32>
    %c1 = arith.constant 1 : index
    %c0_55 = arith.constant 0 : index
    %c0_56 = arith.constant 0 : index
    %113 = vector.load %arg3[%c1, %c0_55, %c0_56] : memref<2x1x32xf32, #tpu.memory_space<vmem>>, vector<1x1x32xf32>
    %114 = vector.shape_cast %113 : vector<1x1x32xf32> to vector<1x32xf32>
    %c1_57 = arith.constant 1 : index
    %c0_58 = arith.constant 0 : index
    %c0_59 = arith.constant 0 : index
    %115 = vector.load %arg4[%c1_57, %c0_58, %c0_59] : memref<2x1x32xf32, #tpu.memory_space<vmem>>, vector<1x1x32xf32>
    %116 = vector.shape_cast %115 : vector<1x1x32xf32> to vector<1x32xf32>
    %cst_60 = arith.constant dense<0.000000e+00> : vector<8xf32>
    %117 = vector.multi_reduction <add>, %112, %cst_60 [1] : vector<8x32xf32> to vector<8xf32>
    %118 = vector.shape_cast %117 : vector<8xf32> to vector<8x1xf32>
    %cst_61 = arith.constant 3.200000e+01 : f32
    %119 = vector.broadcast %cst_61 : f32 to vector<8x1xf32>
    %120 = arith.divf %118, %119 : vector<8x1xf32>
    %121 = vector.broadcast %120 : vector<8x1xf32> to vector<8x32xf32>
    %122 = arith.subf %112, %121 : vector<8x32xf32>
    %123 = arith.mulf %122, %122 : vector<8x32xf32>
    %cst_62 = arith.constant dense<0.000000e+00> : vector<8xf32>
    %124 = vector.multi_reduction <add>, %123, %cst_62 [1] : vector<8x32xf32> to vector<8xf32>
    %125 = vector.shape_cast %124 : vector<8xf32> to vector<8x1xf32>
    %cst_63 = arith.constant 3.200000e+01 : f32
    %126 = vector.broadcast %cst_63 : f32 to vector<8x1xf32>
    %127 = arith.divf %125, %126 : vector<8x1xf32>
    %128 = vector.broadcast %120 : vector<8x1xf32> to vector<8x32xf32>
    %129 = arith.subf %112, %128 : vector<8x32xf32>
    %cst_64 = arith.constant 9.99999997E-7 : f32
    %130 = vector.broadcast %cst_64 : f32 to vector<8x1xf32>
    %131 = arith.addf %127, %130 : vector<8x1xf32>
    %132 = math.rsqrt %131 : vector<8x1xf32>
    %133 = vector.broadcast %132 : vector<8x1xf32> to vector<8x32xf32>
    %134 = arith.mulf %129, %133 : vector<8x32xf32>
    %135 = vector.broadcast %114 : vector<1x32xf32> to vector<8x32xf32>
    %136 = arith.mulf %134, %135 : vector<8x32xf32>
    %137 = vector.broadcast %116 : vector<1x32xf32> to vector<8x32xf32>
    %138 = arith.addf %136, %137 : vector<8x32xf32>
    %139 = arith.truncf %138 : vector<8x32xf32> to vector<8x32xbf16>
    %c1_65 = arith.constant 1 : index
    %c0_66 = arith.constant 0 : index
    %c0_67 = arith.constant 0 : index
    %140 = vector.load %arg5[%c1_65, %c0_66, %c0_67] : memref<2x32x32xbf16, #tpu.memory_space<vmem>>, vector<1x32x32xbf16>
    %141 = vector.shape_cast %140 : vector<1x32x32xbf16> to vector<32x32xbf16>
    %cst_68 = arith.constant dense<0.000000e+00> : vector<8x32xf32>
    %142 = tpu.matmul %139, %141, %cst_68 {dimension_numbers = #tpu.dot_dimension_numbers<[1], [0], [0], [1], [0, 0, 1, 1], [], []>} : vector<8x32xbf16>, vector<32x32xbf16>, vector<8x32xf32> -> vector<8x32xf32>
    %c1_69 = arith.constant 1 : index
    %c0_70 = arith.constant 0 : index
    %c0_71 = arith.constant 0 : index
    %143 = vector.load %arg6[%c1_69, %c0_70, %c0_71] : memref<2x32x32xbf16, #tpu.memory_space<vmem>>, vector<1x32x32xbf16>
    %144 = vector.shape_cast %143 : vector<1x32x32xbf16> to vector<32x32xbf16>
    %cst_72 = arith.constant dense<0.000000e+00> : vector<8x32xf32>
    %145 = tpu.matmul %139, %144, %cst_72 {dimension_numbers = #tpu.dot_dimension_numbers<[1], [0], [0], [1], [0, 0, 1, 1], [], []>} : vector<8x32xbf16>, vector<32x32xbf16>, vector<8x32xf32> -> vector<8x32xf32>
    %c1_73 = arith.constant 1 : index
    %c0_74 = arith.constant 0 : index
    %c0_75 = arith.constant 0 : index
    %146 = vector.load %arg7[%c1_73, %c0_74, %c0_75] : memref<2x32x32xbf16, #tpu.memory_space<vmem>>, vector<1x32x32xbf16>
    %147 = vector.shape_cast %146 : vector<1x32x32xbf16> to vector<32x32xbf16>
    %cst_76 = arith.constant dense<0.000000e+00> : vector<8x32xf32>
    %148 = tpu.matmul %139, %147, %cst_76 {dimension_numbers = #tpu.dot_dimension_numbers<[1], [0], [0], [1], [0, 0, 1, 1], [], []>} : vector<8x32xbf16>, vector<32x32xbf16>, vector<8x32xf32> -> vector<8x32xf32>
    %149 = arith.truncf %142 : vector<8x32xf32> to vector<8x32xbf16>
    %150 = vector.shape_cast %149 : vector<8x32xbf16> to vector<8x4x8xbf16>
    %151 = tpu.transpose %150, [1, 0, 2] : vector<8x4x8xbf16> -> vector<4x8x8xbf16>
    %152 = arith.truncf %145 : vector<8x32xf32> to vector<8x32xbf16>
    %153 = vector.shape_cast %152 : vector<8x32xbf16> to vector<8x4x8xbf16>
    %154 = tpu.transpose %153, [1, 0, 2] : vector<8x4x8xbf16> -> vector<4x8x8xbf16>
    %155 = arith.truncf %148 : vector<8x32xf32> to vector<8x32xbf16>
    %156 = vector.shape_cast %155 : vector<8x32xbf16> to vector<8x4x8xbf16>
    %157 = tpu.transpose %156, [1, 0, 2] : vector<8x4x8xbf16> -> vector<4x8x8xbf16>
    "tpu.trace_start"() <{level = 10 : i32, message = "nqd,nkd->nqk"}> : () -> ()
    %cst_77 = arith.constant dense<0.000000e+00> : vector<4x8x8xf32>
    %158 = tpu.matmul %151, %154, %cst_77 {dimension_numbers = #tpu.dot_dimension_numbers<[2], [2], [1], [1], [0, 0, 0, 1, 1, 1], [0], [0]>} : vector<4x8x8xbf16>, vector<4x8x8xbf16>, vector<4x8x8xf32> -> vector<4x8x8xf32>
    "tpu.trace_stop"() : () -> ()
    %159 = arith.addf %158, %5 : vector<4x8x8xf32>
    %cst_78 = arith.constant dense<0xFF800000> : vector<4x8xf32>
    %160 = vector.multi_reduction <maximumf>, %159, %cst_78 [2] : vector<4x8x8xf32> to vector<4x8xf32>
    %161 = vector.shape_cast %160 : vector<4x8xf32> to vector<4x8x1xf32>
    %162 = vector.broadcast %161 : vector<4x8x1xf32> to vector<4x8x8xf32>
    %163 = arith.subf %159, %162 : vector<4x8x8xf32>
    %164 = math.exp %163 : vector<4x8x8xf32>
    %cst_79 = arith.constant dense<0.000000e+00> : vector<4x8xf32>
    %165 = vector.multi_reduction <add>, %164, %cst_79 [2] : vector<4x8x8xf32> to vector<4x8xf32>
    %166 = vector.shape_cast %165 : vector<4x8xf32> to vector<4x8x1xf32>
    %167 = tpu.reciprocal %166 {approx = true} : vector<4x8x1xf32> -> vector<4x8x1xf32>
    %168 = vector.broadcast %167 : vector<4x8x1xf32> to vector<4x8x8xf32>
    %169 = arith.mulf %164, %168 : vector<4x8x8xf32>
    %170 = arith.truncf %169 : vector<4x8x8xf32> to vector<4x8x8xbf16>
    "tpu.trace_start"() <{level = 10 : i32, message = "nqk,nkd->nqd"}> : () -> ()
    %cst_80 = arith.constant dense<0.000000e+00> : vector<4x8x8xf32>
    %171 = tpu.matmul %170, %157, %cst_80 {dimension_numbers = #tpu.dot_dimension_numbers<[2], [1], [1], [2], [0, 0, 0, 1, 1, 2], [0], [0]>} : vector<4x8x8xbf16>, vector<4x8x8xbf16>, vector<4x8x8xf32> -> vector<4x8x8xf32>
    "tpu.trace_stop"() : () -> ()
    %172 = arith.truncf %171 : vector<4x8x8xf32> to vector<4x8x8xbf16>
    %173 = tpu.transpose %172, [1, 0, 2] : vector<4x8x8xbf16> -> vector<8x4x8xbf16>
    %174 = vector.shape_cast %173 : vector<8x4x8xbf16> to vector<8x32xbf16>
    %c1_81 = arith.constant 1 : index
    %c0_82 = arith.constant 0 : index
    %c0_83 = arith.constant 0 : index
    %175 = vector.load %arg8[%c1_81, %c0_82, %c0_83] : memref<2x32x32xbf16, #tpu.memory_space<vmem>>, vector<1x32x32xbf16>
    %176 = vector.shape_cast %175 : vector<1x32x32xbf16> to vector<32x32xbf16>
    %cst_84 = arith.constant dense<0.000000e+00> : vector<8x32xf32>
    %177 = tpu.matmul %174, %176, %cst_84 {dimension_numbers = #tpu.dot_dimension_numbers<[1], [0], [0], [1], [0, 0, 1, 1], [], []>} : vector<8x32xbf16>, vector<32x32xbf16>, vector<8x32xf32> -> vector<8x32xf32>
    %178 = arith.addf %112, %177 : vector<8x32xf32>
    %cst_85 = arith.constant dense<0.000000e+00> : vector<8xf32>
    %179 = vector.multi_reduction <add>, %178, %cst_85 [1] : vector<8x32xf32> to vector<8xf32>
    %180 = vector.shape_cast %179 : vector<8xf32> to vector<8x1xf32>
    %cst_86 = arith.constant 3.200000e+01 : f32
    %181 = vector.broadcast %cst_86 : f32 to vector<8x1xf32>
    %182 = arith.divf %180, %181 : vector<8x1xf32>
    %183 = vector.broadcast %182 : vector<8x1xf32> to vector<8x32xf32>
    %184 = arith.subf %178, %183 : vector<8x32xf32>
    %185 = arith.mulf %184, %184 : vector<8x32xf32>
    %cst_87 = arith.constant dense<0.000000e+00> : vector<8xf32>
    %186 = vector.multi_reduction <add>, %185, %cst_87 [1] : vector<8x32xf32> to vector<8xf32>
    %187 = vector.shape_cast %186 : vector<8xf32> to vector<8x1xf32>
    %cst_88 = arith.constant 3.200000e+01 : f32
    %188 = vector.broadcast %cst_88 : f32 to vector<8x1xf32>
    %189 = arith.divf %187, %188 : vector<8x1xf32>
    %190 = vector.broadcast %182 : vector<8x1xf32> to vector<8x32xf32>
    %191 = arith.subf %178, %190 : vector<8x32xf32>
    %cst_89 = arith.constant 9.99999997E-7 : f32
    %192 = vector.broadcast %cst_89 : f32 to vector<8x1xf32>
    %193 = arith.addf %189, %192 : vector<8x1xf32>
    %194 = math.rsqrt %193 : vector<8x1xf32>
    %195 = vector.broadcast %194 : vector<8x1xf32> to vector<8x32xf32>
    %196 = arith.mulf %191, %195 : vector<8x32xf32>
    %197 = vector.broadcast %114 : vector<1x32xf32> to vector<8x32xf32>
    %198 = arith.mulf %196, %197 : vector<8x32xf32>
    %199 = vector.broadcast %116 : vector<1x32xf32> to vector<8x32xf32>
    %200 = arith.addf %198, %199 : vector<8x32xf32>
    %201 = arith.truncf %200 : vector<8x32xf32> to vector<8x32xbf16>
    %c1_90 = arith.constant 1 : index
    %c0_91 = arith.constant 0 : index
    %c0_92 = arith.constant 0 : index
    %202 = vector.load %arg9[%c1_90, %c0_91, %c0_92] : memref<2x32x64xbf16, #tpu.memory_space<vmem>>, vector<1x32x64xbf16>
    %203 = vector.shape_cast %202 : vector<1x32x64xbf16> to vector<32x64xbf16>
    %cst_93 = arith.constant dense<0.000000e+00> : vector<8x64xf32>
    %204 = tpu.matmul %201, %203, %cst_93 {dimension_numbers = #tpu.dot_dimension_numbers<[1], [0], [0], [1], [0, 0, 1, 1], [], []>} : vector<8x32xbf16>, vector<32x64xbf16>, vector<8x64xf32> -> vector<8x64xf32>
    %c1_94 = arith.constant 1 : index
    %c0_95 = arith.constant 0 : index
    %c0_96 = arith.constant 0 : index
    %205 = vector.load %arg10[%c1_94, %c0_95, %c0_96] : memref<2x1x64xf32, #tpu.memory_space<vmem>>, vector<1x1x64xf32>
    %206 = vector.shape_cast %205 : vector<1x1x64xf32> to vector<1x64xf32>
    %207 = vector.broadcast %206 : vector<1x64xf32> to vector<8x64xf32>
    %208 = arith.addf %204, %207 : vector<8x64xf32>
    %cst_97 = arith.constant 0.000000e+00 : f32
    %209 = vector.broadcast %cst_97 : f32 to vector<8x64xf32>
    %210 = arith.maximumf %208, %209 : vector<8x64xf32>
    %211 = arith.truncf %210 : vector<8x64xf32> to vector<8x64xbf16>
    %c1_98 = arith.constant 1 : index
    %c0_99 = arith.constant 0 : index
    %c0_100 = arith.constant 0 : index
    %212 = vector.load %arg11[%c1_98, %c0_99, %c0_100] : memref<2x64x32xbf16, #tpu.memory_space<vmem>>, vector<1x64x32xbf16>
    %213 = vector.shape_cast %212 : vector<1x64x32xbf16> to vector<64x32xbf16>
    %cst_101 = arith.constant dense<0.000000e+00> : vector<8x32xf32>
    %214 = tpu.matmul %211, %213, %cst_101 {dimension_numbers = #tpu.dot_dimension_numbers<[1], [0], [0], [1], [0, 0, 1, 1], [], []>} : vector<8x64xbf16>, vector<64x32xbf16>, vector<8x32xf32> -> vector<8x32xf32>
    %c1_102 = arith.constant 1 : index
    %c0_103 = arith.constant 0 : index
    %c0_104 = arith.constant 0 : index
    %215 = vector.load %arg12[%c1_102, %c0_103, %c0_104] : memref<2x1x32xf32, #tpu.memory_space<vmem>>, vector<1x1x32xf32>
    %216 = vector.shape_cast %215 : vector<1x1x32xf32> to vector<1x32xf32>
    %217 = vector.broadcast %216 : vector<1x32xf32> to vector<8x32xf32>
    %218 = arith.addf %214, %217 : vector<8x32xf32>
    %219 = arith.addf %178, %218 : vector<8x32xf32>
    %c0_105 = arith.constant 0 : index
    %c0_106 = arith.constant 0 : index
    %220 = vector.load %arg13[%c0_105, %c0_106] : memref<1x32xf32, #tpu.memory_space<vmem>>, vector<1x32xf32>
    %c0_107 = arith.constant 0 : index
    %c0_108 = arith.constant 0 : index
    %221 = vector.load %arg14[%c0_107, %c0_108] : memref<1x32xf32, #tpu.memory_space<vmem>>, vector<1x32xf32>
    %cst_109 = arith.constant dense<0.000000e+00> : vector<8xf32>
    %222 = vector.multi_reduction <add>, %219, %cst_109 [1] : vector<8x32xf32> to vector<8xf32>
    %223 = vector.shape_cast %222 : vector<8xf32> to vector<8x1xf32>
    %cst_110 = arith.constant 3.200000e+01 : f32
    %224 = vector.broadcast %cst_110 : f32 to vector<8x1xf32>
    %225 = arith.divf %223, %224 : vector<8x1xf32>
    %226 = vector.broadcast %225 : vector<8x1xf32> to vector<8x32xf32>
    %227 = arith.subf %219, %226 : vector<8x32xf32>
    %228 = arith.mulf %227, %227 : vector<8x32xf32>
    %cst_111 = arith.constant dense<0.000000e+00> : vector<8xf32>
    %229 = vector.multi_reduction <add>, %228, %cst_111 [1] : vector<8x32xf32> to vector<8xf32>
    %230 = vector.shape_cast %229 : vector<8xf32> to vector<8x1xf32>
    %cst_112 = arith.constant 3.200000e+01 : f32
    %231 = vector.broadcast %cst_112 : f32 to vector<8x1xf32>
    %232 = arith.divf %230, %231 : vector<8x1xf32>
    %233 = vector.broadcast %225 : vector<8x1xf32> to vector<8x32xf32>
    %234 = arith.subf %219, %233 : vector<8x32xf32>
    %cst_113 = arith.constant 9.99999997E-7 : f32
    %235 = vector.broadcast %cst_113 : f32 to vector<8x1xf32>
    %236 = arith.addf %232, %235 : vector<8x1xf32>
    %237 = math.rsqrt %236 : vector<8x1xf32>
    %238 = vector.broadcast %237 : vector<8x1xf32> to vector<8x32xf32>
    %239 = arith.mulf %234, %238 : vector<8x32xf32>
    %240 = vector.broadcast %220 : vector<1x32xf32> to vector<8x32xf32>
    %241 = arith.mulf %239, %240 : vector<8x32xf32>
    %242 = vector.broadcast %221 : vector<1x32xf32> to vector<8x32xf32>
    %243 = arith.addf %241, %242 : vector<8x32xf32>
    %244 = vector.shape_cast %243 : vector<8x32xf32> to vector<1x8x32xf32>
    %c0_114 = arith.constant 0 : index
    %c0_115 = arith.constant 0 : index
    %c0_116 = arith.constant 0 : index
    %245 = vector.load %arg15[%c0_114, %c0_115, %c0_116] : memref<1x8x32xf32, #tpu.memory_space<vmem>>, vector<1x8x32xf32>
    tpu.vector_store %arg15[%c0_114, %c0_115, %c0_116], %244 {strides = array<i32>} : memref<1x8x32xf32, #tpu.memory_space<vmem>>, vector<1x8x32xf32>,
    return
  }
  func.func @transform_0(%arg0: i32) -> (i32, i32, i32) {
    %c0_i32 = arith.constant 0 : i32
    %c0_i32_0 = arith.constant 0 : i32
    %c0_i32_1 = arith.constant 0 : i32
    return %arg0, %c0_i32, %c0_i32_0 : i32, i32, i32
  }
  func.func @transform_1(%arg0: i32) -> (i32, i32, i32) {
    %c0_i32 = arith.constant 0 : i32
    %c0_i32_0 = arith.constant 0 : i32
    %c0_i32_1 = arith.constant 0 : i32
    return %arg0, %c0_i32, %c0_i32_0 : i32, i32, i32
  }
  func.func @transform_2(%arg0: i32) -> (i32, i32, i32) {
    %c0_i32 = arith.constant 0 : i32
    %c0_i32_0 = arith.constant 0 : i32
    %c0_i32_1 = arith.constant 0 : i32
    %c0_i32_2 = arith.constant 0 : i32
    return %c0_i32, %c0_i32_0, %c0_i32_1 : i32, i32, i32
  }
  func.func @transform_3(%arg0: i32) -> (i32, i32, i32) {
    %c0_i32 = arith.constant 0 : i32
    %c0_i32_0 = arith.constant 0 : i32
    %c0_i32_1 = arith.constant 0 : i32
    %c0_i32_2 = arith.constant 0 : i32
    return %c0_i32, %c0_i32_0, %c0_i32_1 : i32, i32, i32
  }
  func.func @transform_4(%arg0: i32) -> (i32, i32, i32) {
    %c0_i32 = arith.constant 0 : i32
    %c0_i32_0 = arith.constant 0 : i32
    %c0_i32_1 = arith.constant 0 : i32
    %c0_i32_2 = arith.constant 0 : i32
    return %c0_i32, %c0_i32_0, %c0_i32_1 : i32, i32, i32
  }
  func.func @transform_5(%arg0: i32) -> (i32, i32, i32) {
    %c0_i32 = arith.constant 0 : i32
    %c0_i32_0 = arith.constant 0 : i32
    %c0_i32_1 = arith.constant 0 : i32
    %c0_i32_2 = arith.constant 0 : i32
    return %c0_i32, %c0_i32_0, %c0_i32_1 : i32, i32, i32
  }
  func.func @transform_6(%arg0: i32) -> (i32, i32, i32) {
    %c0_i32 = arith.constant 0 : i32
    %c0_i32_0 = arith.constant 0 : i32
    %c0_i32_1 = arith.constant 0 : i32
    %c0_i32_2 = arith.constant 0 : i32
    return %c0_i32, %c0_i32_0, %c0_i32_1 : i32, i32, i32
  }
  func.func @transform_7(%arg0: i32) -> (i32, i32, i32) {
    %c0_i32 = arith.constant 0 : i32
    %c0_i32_0 = arith.constant 0 : i32
    %c0_i32_1 = arith.constant 0 : i32
    %c0_i32_2 = arith.constant 0 : i32
    return %c0_i32, %c0_i32_0, %c0_i32_1 : i32, i32, i32
  }
  func.func @transform_8(%arg0: i32) -> (i32, i32, i32) {
    %c0_i32 = arith.constant 0 : i32
    %c0_i32_0 = arith.constant 0 : i32
    %c0_i32_1 = arith.constant 0 : i32
    %c0_i32_2 = arith.constant 0 : i32
    return %c0_i32, %c0_i32_0, %c0_i32_1 : i32, i32, i32
  }
  func.func @transform_9(%arg0: i32) -> (i32, i32, i32) {
    %c0_i32 = arith.constant 0 : i32
    %c0_i32_0 = arith.constant 0 : i32
    %c0_i32_1 = arith.constant 0 : i32
    %c0_i32_2 = arith.constant 0 : i32
    return %c0_i32, %c0_i32_0, %c0_i32_1 : i32, i32, i32
  }
  func.func @transform_10(%arg0: i32) -> (i32, i32, i32) {
    %c0_i32 = arith.constant 0 : i32
    %c0_i32_0 = arith.constant 0 : i32
    %c0_i32_1 = arith.constant 0 : i32
    %c0_i32_2 = arith.constant 0 : i32
    return %c0_i32, %c0_i32_0, %c0_i32_1 : i32, i32, i32
  }
  func.func @transform_11(%arg0: i32) -> (i32, i32, i32) {
    %c0_i32 = arith.constant 0 : i32
    %c0_i32_0 = arith.constant 0 : i32
    %c0_i32_1 = arith.constant 0 : i32
    %c0_i32_2 = arith.constant 0 : i32
    return %c0_i32, %c0_i32_0, %c0_i32_1 : i32, i32, i32
  }
  func.func @transform_12(%arg0: i32) -> (i32, i32) {
    %c0_i32 = arith.constant 0 : i32
    %c0_i32_0 = arith.constant 0 : i32
    %c0_i32_1 = arith.constant 0 : i32
    return %c0_i32, %c0_i32_0 : i32, i32
  }
  func.func @transform_13(%arg0: i32) -> (i32, i32) {
    %c0_i32 = arith.constant 0 : i32
    %c0_i32_0 = arith.constant 0 : i32
    %c0_i32_1 = arith.constant 0 : i32
    return %c0_i32, %c0_i32_0 : i32, i32
  }
  func.func @transform_14(%arg0: i32) -> (i32, i32, i32) {
    %c0_i32 = arith.constant 0 : i32
    %c0_i32_0 = arith.constant 0 : i32
    %c0_i32_1 = arith.constant 0 : i32
    return %arg0, %c0_i32, %c0_i32_0 : i32, i32, i32
  }
}

</mosaic_0001>

<bundles_post_ra>
// kernel: _lambda_.1
= control target key start
LH: loop header
LB: loop body
LE: loop exit
PB: predicated region body
PF: predicated region fallthrough
CT: control target
= control target key end

     0   :  { %s4974_s0 = inlined_call_operand.vmem [shape: f32[2,8,32], index: 0, kind: input, shape index: {}]   ;;  %s4975_s1 = inlined_call_operand.vmem [shape: f32[2,1,8], index: 1, kind: input, shape index: {}]   ;;  %s4976_s2 = inlined_call_operand.vmem [shape: f32[2,1,32], index: 2, kind: input, shape index: {}]   ;;  %s4977_s3 = inlined_call_operand.vmem [shape: f32[2,1,32], index: 3, kind: input, shape index: {}, may-alias: {3,11}]   ;;  %s4978_s4 = inlined_call_operand.vmem [shape: bf16[2,32,32], index: 4, kind: input, shape index: {}]   ;;  %s4979_s5 = inlined_call_operand.vmem [shape: bf16[2,32,32], index: 5, kind: input, shape index: {}]   ;;  %s4980_s6 = inlined_call_operand.vmem [shape: bf16[2,32,32], index: 6, kind: input, shape index: {}]   ;;  %s4981_s7 = inlined_call_operand.vmem [shape: bf16[2,32,32], index: 7, kind: input, shape index: {}]   ;;  %s4982_s8 = inlined_call_operand.vmem [shape: bf16[2,32,64], index: 8, kind: input, shape index: {}]   ;;  %s4983_s9 = inlined_call_operand.vmem [shape: f32[2,1,64], index: 9, kind: input, shape index: {}]   ;;  %s4984_s10 = inlined_call_operand.vmem [shape: bf16[2,64,32], index: 10, kind: input, shape index: {}]   ;;  %s4985_s11 = inlined_call_operand.vmem [shape: f32[2,1,32], index: 11, kind: input, shape index: {}, may-alias: {3,11}]   ;;  %s4986_s12 = inlined_call_operand.vmem [shape: f32[1,32], index: 12, kind: input, shape index: {}]   ;;  %s4987_s13 = inlined_call_operand.vmem [shape: f32[1,32], index: 13, kind: input, shape index: {}]   ;;  %s4988_s14 = inlined_call_operand.hbm [shape: f32[2,8,32], index: 14, kind: output, shape index: {}]  }
   0x1   :  { %4997 = sst [smem:[#allocation7_spill]] %s4974_s0 }
   0x2   :  { %4998 = sst [smem:[#allocation8_spill]] %s4975_s1 }
   0x3   :  { %4999 = sst [smem:[#allocation9_spill]] %s4976_s2 }
   0x4   :  { %19 = vsyncpa [#allocation3], 0 }
   0x5   :  { %21 = vsyncpa [#allocation3 + $0x1], 0  ;;  %s4319_s29 = smov 0   ;;  %s4321_s30 = smov 0  }
   0x6   :  { %s4323_s15 = smov 0   ;;  %s4325_s16 = smov 0  }
   0x7 LB: > { %5000 = sst [smem:[#allocation5_spill]] %s4226_s15  ;;  %s4340_s17 = sadd.s32 4294967295, %s4230_s16   ;;  %s4230_s16 = sphi %s4325_s16, %s5016_s16   ;;  %s4226_s15 = sphi %s4323_s15, %s5013_s15   ;;  %s4222_s30 = sphi %s4321_s30, %s5015_s30   ;;  %s4218_s29 = sphi %s4319_s29, %s5014_s29  }
   0x8   : > { %s3665_s18 = sadd.s32 4294967294, %s4230_s16   ;;  %s4344_s19 = sadd.s32 1, %s4230_s16  }
   0x9   : > { %s338_s20 = sadd.s32 1, %s4226_s15  ;;  %s335_s21 = ssub.s32 %s4230_s16, %s4344_s19 }
   0xa   : > { %p348_p0 = scmp.ne.s32.totalorder %s4226_s15, %s4222_s30  ;;  %p336_p1 = scmp.eq.s32.totalorder %s335_s21, 0 }
   0xb   : > { %p349_p2 = scmp.eq.s32.totalorder %s4340_s17, 1  ;;  %p354_p3 = scmp.ne.s32.totalorder %s4222_s30, %s4218_s29 }
   0xc   : > { %p355_p4 = scmp.eq.s32.totalorder %s3665_s18, 1  ;;  %p3668_p7 = scmp.ge.s32.totalorder %s4230_s16, 1 }
   0xd   : > { %s4355_s22 = scalar_select %p336_p1, %s4226_s15, %s338_s20  }
   0xe   : > { %p4357_p5 = por %p349_p2, %p348_p0  ;;  %p4361_p6 = por %p355_p4, %p354_p3 }
   0xf   : > { %5001 = sst [smem:[#allocation6_spill]] %s4355_s22  ;;  %p422_p8 = scmp.lt.s32.totalorder %s4230_s16, 3 }
  0x11   : > { %p423_p9 = pnand %p3668_p7, %p422_p8 }
  0x12   : > { %p470_p10 = scmp.lt.s32.totalorder (!%p423_p9), %s4340_s17, 1  ;;  %vm488_vm0 = vcmask (!%p423_p9), 261120   ;;  %s5004_s0 = sld [smem:[#allocation7_spill]] (!%p423_p9)  ;;  %v4096_v7 = vld [vmem:[%s4978_s4] sm:$0xff] (!%p423_p9)   ;;  %v4232_v9 = vmov (!%p423_p9), 0.0   ;;  %v4098_v10 = vld [vmem:[%s4978_s4 + $0x8] sm:$0xff] (!%p423_p9)   ;;  %v700_v40 = vlaneseq (!%p423_p9) }
  0x13   : > { %426 = sbr.rel (%p423_p9) target bundleno = 5552 (0x15b0), region = 76  ;;  %v4097_v8 = vld [vmem:[%s4980_s6] sm:$0xff] (!%p423_p9)   ;;  %3846 = vmatprep.subr.bf16.mxu1 (!%p423_p9), %v4232_v9  ;;  %3862 = vmatprep.subr.bf16.mxu0 (!%p423_p9), %v4232_v9  ;;  %v4099_v11 = vld [vmem:[%s4980_s6 + $0x8] sm:$0xff] (!%p423_p9)   ;;  %vm4233_vm1 = vmmov (!%p423_p9), 0   ;;  %s5005_s2 = sld [smem:[#allocation9_spill]] (!%p423_p9)  ;;  %v4239_v59 = vmov (!%p423_p9), 0  }
  0x14   : > { %3847 = vmatpush3.bf16.msra.mxu1 (!%p423_p9), %v4096_v7  ;;  %3863 = vmatpush3.bf16.msra.mxu0 (!%p423_p9), %v4097_v8  ;;  %v4410_v18 = vld [vmem:[%s4977_s3] ss:$0 sm:$0xff] (!%p423_p9)  ;;  %v4101_v23 = vld [vmem:[%s4979_s5 + $0x8] sm:$0xff] (!%p423_p9)   ;;  %s4995_s15 = smov (!%p423_p9), 120   ;;  %s4236_s22 = smov (!%p423_p9), 112   ;;  %v701_v44 = vshrl.u32 (!%p423_p9), %v700_v40, 7 }
  0x15   : > { %3848 = vmatprep.subr.bf16.mxu1 (!%p423_p9), %v4232_v9  ;;  %3864 = vmatprep.subr.bf16.mxu0 (!%p423_p9), %v4232_v9  ;;  %v4100_v21 = vld [vmem:[%s4979_s5] sm:$0xff] (!%p423_p9)   ;;  %v4237_v38 = vmov (!%p423_p9), 1983009808   ;;  %v4238_v41 = vmov (!%p423_p9), 1934713408   ;;  %vm1196_vm2 = vcmask (!%p423_p9), 64512  }
  0x16   : > { %3850 = vmatprep.mubr.msk.bf16.mxu1 (!%p423_p9), %vm4233_vm1, %v4232_v9  ;;  %3866 = vmatprep.mubr.msk.bf16.mxu0 (!%p423_p9), %vm4233_vm1, %v4232_v9  ;;  %v698_v39 = vunpack.c.l.s4 (!%p423_p9), %v4237_v38  ;;  %v715_v42 = vunpack.c.l.s4 (!%p423_p9), %v4238_v41  ;;  %s5006_s1 = sld [smem:[#allocation8_spill]] (!%p423_p9)  ;;  %vm1432_vm3 = vcmask (!%p423_p9), 1043456   ;;  %s4992_s21 = smov (!%p423_p9), 8   ;;  %vm1785_vm4 = vcmask (!%p423_p9), 130048  }
  0x17   : > { %vm1788_vm5 = vcmask (!%p423_p9), 195584   ;;  %vm1973_vm6 = vcmask (!%p423_p9), 523264   ;;  %s5010_s28 = smov (!%p423_p9), 16   ;;  %s5011_s20 = smov (!%p423_p9), 24  }
  0x18   : > { %3849 = vmatpush3.bf16.msra.mxu1 (!%p423_p9), %v4098_v10  ;;  %3865 = vmatpush3.bf16.msra.mxu0 (!%p423_p9), %v4099_v11  ;;  %v699_v43 = vunpack.c.0.s8 (!%p423_p9), %v698_v39  ;;  %v716_v45 = vunpack.c.0.s8 (!%p423_p9), %v715_v42 }
  0x19   : > { %3854 = vmatprep.subr.bf16.mxu1 (!%p423_p9), %v4232_v9  ;;  %3876 = vmatprep.subr.bf16.mxu0 (!%p423_p9), %v4232_v9  ;;  %v4405_v16 = vld [vmem:[%s5005_s2] ss:$0 sm:$0xff] (!%p423_p9) }
  0x1a   : > { %s4369_s25 = scalar_select %p470_p10, %s4340_s17, 1  ;;  %v4439_v46 = vsub.s32 %v699_v43, %v701_v44  ;;  %v4442_v50 = vsub.s32 %v716_v45, %v701_v44 }
  0x1c   : > { %s3670_s26 = sshll.u32 %s4369_s25, 3  ;;  %s4507_s27 = scalar_lea.vmem %s5006_s1, %s4369_s25 }
  0x1d   : > { %s4375_s18 = scalar_lea.vmem %s5004_s0, %s3670_s26  ;;  %s4993_s0 = smov 104  }
  0x1e   : > { %v478_v0 = vld [vmem:[%s4375_s18] sm:$0xff]  ;;  %s4991_s25 = smov 16   ;;  %s4990_s26 = smov 24  }
  0x1f   : > { %v489_v1 = vsel %vm488_vm0, %v478_v0, 0.0 }
  0x20   : > { %490 = vadd.xlane.f32.xlu0 %v489_v1 }
  0xad   : > { %v491_v2 = vpop.xlane.xlu0 %490 }
  0xae   : > { %v493_v3 = vmul.f32 0.03125, %v491_v2 }
  0xb0   : > { %v494_v4 = vsub.f32 %v478_v0, %v493_v3 }
  0xb2   : > { %v495_v5 = vmul.f32 %v494_v4, %v494_v4 }
  0xb4   : > { %v496_v6 = vsel %vm488_vm0, %v495_v5, 0.0 }
  0xb5   : > { %497 = vadd.xlane.f32.xlu0 %v496_v6 }
 0x142   : > { %v498_v12 = vpop.xlane.xlu0 %497 }
 0x143   : > { %v499_v13 = vmul.f32 0.03125, %v498_v12 }
 0x145   : > { %v500_v14 = vadd.f32 1e-06, %v499_v13 }
 0x147   : > { %4124 = vrsqrt.f32 %v500_v14 }
 0x151   : > { %v4125_v15 = vpop.eup %4124 }
 0x152   : > { %v502_v17 = vmul.f32 %v4125_v15, %v494_v4 }
 0x154   : > { %v509_v19 = vmul.f32 %v4405_v16, %v502_v17 }
 0x156   : > { %v516_v20 = vadd.f32 %v4410_v18, %v509_v19 }
 0x158   : > { %v517_v22 = vpack.c.bf16 %v516_v20, %v516_v20 }
 0x15a   : > { %3851 = vmatmul.mubr.msk.bf16.vlgmr.msra.gmra.mrb[0].mxu1 %vm488_vm0, %v517_v22  ;;  %3867 = vmatmul.mubr.msk.bf16.vlgmr.msra.gmra.mrb[0].mxu0 %vm488_vm0, %v517_v22 }
 0x15b   : > { %3855 = vmatpush3.bf16.msra.mxu1 %v4100_v21  ;;  %3858 = vmatprep.mubr.msk.bf16.mxu1 %vm4233_vm1, %v4232_v9 }
 0x15c   : > { %3856 = vmatprep.subr.bf16.mxu1 %v4232_v9  ;;  %3878 = vmatprep.mubr.msk.bf16.mxu0 %vm4233_vm1, %v4232_v9 }
 0x15f   : > { %3857 = vmatpush3.bf16.msra.mxu1 %v4101_v23 }
 0x160   : > { %3870 = vmatprep.subr.bf16.mxu1 %v4232_v9 }
 0x162   : > { %3859 = vmatmul.mubr.msk.bf16.vlgmr.msra.gmra.mrb[4].mxu1 %vm488_vm0, %v517_v22 }
 0x163   : > { %3872 = vmatprep.mubr.msk.bf16.mxu1 %vm4233_vm1, %v4232_v9 }
 0x22d   : > { %v571_v24 = vpop.f32.mrb[0].mxu1  ;;  %v4431_v25 = vpop.f32.mrb[0].mxu0 }
 0x22e   : > { %v3852_v26 = vpop.f32.mrb[1].mxu1  ;;  %v3868_v27 = vpop.f32.mrb[1].mxu0  ;;  %v689_v37 = vpack.c.bf16 %v571_v24, %v571_v24 }
 0x22f   : > { %v574_v28 = vpop.f32.mrb[2].mxu1  ;;  %v686_v29 = vpop.f32.mrb[2].mxu0 }
 0x230   : > { %v3853_v30 = vpop.f32.mrb[3].mxu1  ;;  %v3869_v31 = vpop.f32.mrb[3].mxu0  ;;  %v703_v6 = vrot.slane %v689_v37, %v4439_v46 }
 0x235   : > { %v627_v32 = vpop.f32.mrb[4].mxu1 }
 0x236   : > { %v858_v33 = vpack.c.bf16 %v627_v32, %v627_v32  ;;  %v3860_v34 = vpop.f32.mrb[5].mxu1 }
 0x237   : > { %v630_v35 = vpop.f32.mrb[6].mxu1 }
 0x238   : > { %864 = vrot.lane.b32.xlu0 %v858_v33, %s4993_s0  ;;  %860 = vrot.lane.b32.xlu1 %v858_v33, %s4995_s15  ;;  %v3861_v36 = vpop.f32.mrb[7].mxu1  ;;  %v872_v58 = vrot.slane %v858_v33, %v4439_v46 }
 0x23c   : > { %862 = vrot.lane.b32.xlu1 %v858_v33, %s4236_s22 }
 0x240   : > { %691 = vrot.lane.b32.xlu1 %v689_v37, %s4995_s15 }
 0x244   : > { %693 = vrot.lane.b32.xlu1 %v689_v37, %s4236_s22 }
 0x248   : > { %695 = vrot.lane.b32.xlu1 %v689_v37, %s4993_s0 }
 0x2aa   : > { %v865_v47 = vpop.permute.xlu0 %864  ;;  %v861_v48 = vpop.permute.xlu1 %860 }
 0x2ab   : > { %v914_v49 = vrot.slane %v865_v47, %v4439_v46  ;;  %v906_v51 = vrot.slane %v861_v48, %v4439_v46 }
 0x2ad   : > { %v915_v52 = vcombine.low %v906_v51, %v914_v49  ;;  %v916_v53 = vcombine.high %v906_v51, %v914_v49 }
 0x2ae   : > { %v863_v54 = vpop.permute.xlu1 %862 }
 0x2af   : > { %v923_v55 = vrot.slane %v915_v52, %v4442_v50  ;;  %v930_v56 = vrot.slane %v916_v53, %v4442_v50  ;;  %v880_v57 = vrot.slane %v863_v54, %v4439_v46 }
 0x2b1   : > { %v931_v60 = vcombine.high %v923_v55, %v4239_v59  ;;  %v881_v61 = vcombine.low %v872_v58, %v880_v57  ;;  %v882_v62 = vcombine.high %v872_v58, %v880_v57  ;;  %v932_v0 = vcombine.high %v930_v56, %v4239_v59 }
 0x2b2   : > { %v692_v63 = vpop.permute.xlu1 %691  ;;  %v938_v3 = vshrl.u32 %v923_v55, 16  ;;  %v954_v5 = vshrl.u32 %v930_v56, 16 }
 0x2b3   : > { %v889_v1 = vrot.slane %v881_v61, %v4442_v50  ;;  %v896_v2 = vrot.slane %v882_v62, %v4442_v50  ;;  %v946_v4 = vshrl.u32 %v931_v60, 16  ;;  %v962_v13 = vshrl.u32 %v932_v0, 16 }
 0x2b4   : > { %v737_v35 = vrot.slane %v692_v63, %v4439_v46 }
 0x2b5   : > { %v897_v7 = vcombine.high %v889_v1, %v4239_v59  ;;  %v898_v8 = vcombine.high %v896_v2, %v4239_v59  ;;  %v935_v10 = vpack.i.b16 %v923_v55, %v889_v1  ;;  %v937_v11 = vshrl.u32 %v889_v1, 16 }
 0x2b6   : > { %v694_v12 = vpop.permute.xlu1 %693  ;;  %v951_v14 = vpack.i.b16 %v930_v56, %v896_v2  ;;  %v953_v15 = vshrl.u32 %v896_v2, 16 }
 0x2b7   : > { %v711_v17 = vrot.slane %v694_v12, %v4439_v46  ;;  %v939_v19 = vpack.i.b16 %v938_v3, %v937_v11  ;;  %v943_v20 = vpack.i.b16 %v931_v60, %v897_v7  ;;  %v945_v21 = vshrl.u32 %v897_v7, 16 }
 0x2b8   : > { %v959_v22 = vpack.i.b16 %v932_v0, %v898_v8  ;;  %v955_v23 = vpack.i.b16 %v954_v5, %v953_v15  ;;  %v961_v24 = vshrl.u32 %v898_v8, 16  ;;  %v965_v26 = vcombine.low %v935_v10, %v951_v14 }
 0x2b9   : > { %v712_v27 = vcombine.low %v703_v6, %v711_v17  ;;  %v947_v28 = vpack.i.b16 %v946_v4, %v945_v21  ;;  %v713_v30 = vcombine.high %v703_v6, %v711_v17 }
 0x2ba   : > { %v973_v29 = vcombine.low %v943_v20, %v959_v22  ;;  %v696_v31 = vpop.permute.xlu1 %695  ;;  %v963_v32 = vpack.i.b16 %v962_v13, %v961_v24  ;;  %v990_v33 = vcombine.low %v939_v19, %v955_v23  ;;  %v972_v39 = vrot.slane %v965_v26, %v4439_v46 }
 0x2bb   : > { %v720_v34 = vrot.slane %v712_v27, %v4442_v50  ;;  %v727_v36 = vrot.slane %v713_v30, %v4442_v50  ;;  %v745_v37 = vrot.slane %v696_v31, %v4439_v46 }
 0x2bc   : > { %v980_v38 = vrot.slane %v973_v29, %v4439_v46  ;;  %v998_v40 = vcombine.low %v947_v28, %v963_v32  ;;  %v997_v47 = vrot.slane %v990_v33, %v4439_v46 }
 0x2bd   : > { %v728_v41 = vcombine.high %v720_v34, %v4239_v59  ;;  %v746_v42 = vcombine.low %v737_v35, %v745_v37  ;;  %v747_v43 = vcombine.high %v737_v35, %v745_v37  ;;  %v729_v44 = vcombine.high %v727_v36, %v4239_v59 }
 0x2be   : > { %v981_v45 = vcombine.low %v972_v39, %v980_v38  ;;  %v1005_v48 = vrot.slane %v998_v40, %v4439_v46  ;;  %v768_v49 = vshrl.u32 %v720_v34, 16  ;;  %v784_v54 = vshrl.u32 %v727_v36, 16 }
 0x2bf   : > { %v754_v51 = vrot.slane %v746_v42, %v4442_v50  ;;  %v761_v52 = vrot.slane %v747_v43, %v4442_v50  ;;  %v776_v53 = vshrl.u32 %v728_v41, 16  ;;  %v792_v62 = vshrl.u32 %v729_v44, 16 }
 0x2c0   : > { %v988_v55 = vrot.slane %v981_v45, %v4442_v50  ;;  %v1006_v56 = vcombine.low %v997_v47, %v1005_v48 }
 0x2c1   : > { %v762_v57 = vcombine.high %v754_v51, %v4239_v59  ;;  %v763_v58 = vcombine.high %v761_v52, %v4239_v59  ;;  %v766_v60 = vpack.i.b16 %v754_v51, %v720_v34  ;;  %v769_v61 = vshrl.u32 %v754_v51, 16 }
 0x2c2   : > { %v782_v63 = vpack.i.b16 %v761_v52, %v727_v36  ;;  %v785_v0 = vshrl.u32 %v761_v52, 16  ;;  %v1013_v1 = vrot.slane %v1006_v56, %v4442_v50  ;;  %v1018_v13 = vshrl.u32 %v988_v55, 16  ;;  %v3671_v52 = vld [vmem:[%s4507_s27] ss:$0 sm:$0xff] }
 0x2c3   : > { %v770_v2 = vpack.i.b16 %v769_v61, %v768_v49  ;;  %v774_v3 = vpack.i.b16 %v762_v57, %v728_v41  ;;  %v777_v4 = vshrl.u32 %v762_v57, 16  ;;  %v790_v5 = vpack.i.b16 %v763_v58, %v729_v44 }
 0x2c4   : > { %v786_v6 = vpack.i.b16 %v785_v0, %v784_v54  ;;  %v793_v7 = vshrl.u32 %v763_v58, 16  ;;  %v796_v8 = vcombine.low %v766_v60, %v782_v63  ;;  %v1017_v10 = vpack.i.b16 %v1013_v1, %v988_v55 }
 0x2c5   : > { %v778_v11 = vpack.i.b16 %v777_v4, %v776_v53  ;;  %v804_v12 = vcombine.low %v774_v3, %v790_v5  ;;  %v1019_v14 = vshrl.u32 %v1013_v1, 16  ;;  %v1014_v24 = vcombine.high %v1013_v1, %v4239_v59 }
 0x2c6   : > { %v794_v15 = vpack.i.b16 %v793_v7, %v792_v62  ;;  %v821_v17 = vcombine.low %v770_v2, %v786_v6  ;;  %v1201_v19 = vsel %vm1196_vm2, %v1017_v10, 0  ;;  %v803_v20 = vrot.slane %v796_v8, %v4439_v46 }
 0x2c7   : > { %v811_v21 = vrot.slane %v804_v12, %v4439_v46  ;;  %3871 = vmatpush3.bf16.xpose.msra.mxu1 %v1201_v19  ;;  %v1020_v22 = vpack.i.b16 %v1019_v14, %v1018_v13  ;;  %v989_v30 = vcombine.high %v988_v55, %v4239_v59  ;;  %v1025_v33 = vshrl.u32 %v1014_v24, 16 }
 0x2c8   : > { %v829_v23 = vcombine.low %v778_v11, %v794_v15  ;;  %3882 = vmatprep.subr.bf16.mxu1 %v4232_v9  ;;  %v828_v28 = vrot.slane %v821_v17, %v4439_v46  ;;  %v1027_v15 = vpack.c.bf16 %v4431_v25, %v4431_v25 }
 0x2c9   : > { %v812_v26 = vcombine.low %v803_v20, %v811_v21  ;;  %v1247_v27 = vsel %vm1196_vm2, %v1020_v22, 0  ;;  %v1023_v35 = vpack.i.b16 %v1014_v24, %v989_v30  ;;  %v1024_v36 = vshrl.u32 %v989_v30, 16 }
 0x2ca   : > { %v836_v29 = vrot.slane %v829_v23, %v4439_v46  ;;  %3877 = vmatpush3.bf16.xpose.msra.mxu0 %v1247_v27 }
 0x2cb   : > { %3888 = vmatprep.subr.bf16.mxu0 %v4232_v9  ;;  %v819_v32 = vrot.slane %v812_v26, %v4442_v50  ;;  %v1026_v40 = vpack.i.b16 %v1025_v33, %v1024_v36  ;;  %v1293_v41 = vsel %vm1196_vm2, %v1023_v35, 0 }
 0x2cc   : > { %v837_v31 = vcombine.low %v828_v28, %v836_v29 }
 0x2cd   : > { %v849_v38 = vshrl.u32 %v819_v32, 16  ;;  %v1339_v44 = vsel %vm1196_vm2, %v1026_v40, 0  ;;  %v820_v45 = vcombine.high %v819_v32, %v4239_v59  ;;  %v1041_v40 = vrot.slane %v1027_v15, %v4439_v46 }
 0x2ce   : > { %v844_v34 = vrot.slane %v837_v31, %v4442_v50 }
 0x2cf   : > { %v855_v49 = vshrl.u32 %v820_v45, 16 }
 0x2d0   : > { %v848_v37 = vpack.i.b16 %v844_v34, %v819_v32  ;;  %v850_v39 = vshrl.u32 %v844_v34, 16  ;;  %v845_v43 = vcombine.high %v844_v34, %v4239_v59 }
 0x2d2   : > { %3873 = vmatmul.mubr.msk.bf16.vlgmr.msra.gmra.mrb[8].mxu1 %vm1196_vm2, %v848_v37  ;;  %v851_v42 = vpack.i.b16 %v850_v39, %v849_v38  ;;  %v856_v47 = vshrl.u32 %v845_v43, 16  ;;  %v854_v48 = vpack.i.b16 %v845_v43, %v820_v45 }
 0x2d3   : > { %3883 = vmatpush3.bf16.xpose.msra.mxu1 %v1293_v41  ;;  %3884 = vmatprep.mubr.msk.bf16.mxu1 %vm4233_vm1, %v4232_v9 }
 0x2d4   : > { %3879 = vmatmul.mubr.msk.bf16.vlgmr.msra.gmra.mrb[4].mxu0 %vm1196_vm2, %v851_v42  ;;  %3894 = vmatprep.subr.bf16.mxu1 %v4232_v9  ;;  %v857_v51 = vpack.i.b16 %v856_v47, %v855_v49 }
 0x2d5   : > { %3889 = vmatpush3.bf16.xpose.msra.mxu0 %v1339_v44  ;;  %3890 = vmatprep.mubr.msk.bf16.mxu0 %vm4233_vm1, %v4232_v9 }
 0x2d6   : > { %3900 = vmatprep.subr.bf16.mxu0 %v4232_v9 }
 0x2da   : > { %3885 = vmatmul.mubr.msk.bf16.vlgmr.msra.gmra.mrb[12].mxu1 %vm1196_vm2, %v854_v48 }
 0x2db   : > { %3896 = vmatprep.mubr.msk.bf16.mxu1 %vm4233_vm1, %v4232_v9 }
 0x2dc   : > { %3891 = vmatmul.mubr.msk.bf16.vlgmr.msra.gmra.mrb[8].mxu0 %vm1196_vm2, %v857_v51 }
 0x2dd   : > { %3902 = vmatprep.mubr.msk.bf16.mxu0 %vm4233_vm1, %v4232_v9 }
 0x3a5   : > { %v1237_v53 = vpop.f32.mrb[8].mxu1 }
 0x3a6   : > { %v1238_v54 = vadd.f32 %v3671_v52, %v1237_v53  ;;  %v3874_v55 = vpop.f32.mrb[9].mxu1 }
 0x3a7   : > { %v1240_v56 = vpop.f32.mrb[10].mxu1  ;;  %v1283_v57 = vpop.f32.mrb[4].mxu0 }
 0x3a8   : > { %v1284_v58 = vadd.f32 %v3671_v52, %v1283_v57  ;;  %v3875_v60 = vpop.f32.mrb[11].mxu1  ;;  %v3880_v61 = vpop.f32.mrb[5].mxu0  ;;  %v1381_v62 = vsel %vm1196_vm2, %v1238_v54, -inf }
 0x3a9   : > { %v1286_v63 = vpop.f32.mrb[6].mxu0  ;;  %1382 = vmax.xlane.f32.xlu1 %v1381_v62 }
 0x3aa   : > { %v3881_v0 = vpop.f32.mrb[7].mxu0  ;;  %v1384_v1 = vsel %vm1196_vm2, %v1284_v58, -inf }
 0x3ab   : > { %1385 = vmax.xlane.f32.xlu0 %v1384_v1 }
 0x3ad   : > { %v1329_v2 = vpop.f32.mrb[12].mxu1 }
 0x3ae   : > { %v1330_v3 = vadd.f32 %v3671_v52, %v1329_v2  ;;  %v3886_v4 = vpop.f32.mrb[13].mxu1 }
 0x3af   : > { %v1332_v5 = vpop.f32.mrb[14].mxu1  ;;  %v1375_v6 = vpop.f32.mrb[8].mxu0 }
 0x3b0   : > { %v1376_v7 = vadd.f32 %v3671_v52, %v1375_v6  ;;  %v3887_v8 = vpop.f32.mrb[15].mxu1  ;;  %v3892_v10 = vpop.f32.mrb[9].mxu0  ;;  %v1387_v11 = vsel %vm1196_vm2, %v1330_v3, -inf }
 0x3b1   : > { %v1378_v12 = vpop.f32.mrb[10].mxu0  ;;  %1388 = vmax.xlane.f32.xlu1 %v1387_v11 }
 0x3b2   : > { %v3893_v13 = vpop.f32.mrb[11].mxu0  ;;  %v1390_v14 = vsel %vm1196_vm2, %v1376_v7, -inf }
 0x3b5   : > { %1391 = vmax.xlane.f32.xlu1 %v1390_v14 }
 0x3c6   : > { %1031 = vrot.lane.b32.xlu1 %v1027_v15, %s4236_s22 }
 0x436   : > { %v1383_v17 = vpop.xlane.xlu1 %1382 }
 0x437   : > { %v1393_v19 = vsub.f32 %v1238_v54, %v1383_v17 }
 0x438   : > { %v1386_v20 = vpop.xlane.xlu0 %1385 }
 0x439   : > { %v1397_v21 = vmul.f32 1.442695, %v1393_v19  ;;  %v1394_v22 = vsub.f32 %v1284_v58, %v1386_v20 }
 0x43b   : > { %4126 = vpow2.f32 %v1397_v21  ;;  %v1399_v23 = vmul.f32 1.442695, %v1394_v22 }
 0x43d   : > { %4128 = vpow2.f32 %v1399_v23 }
 0x43e   : > { %v1389_v28 = vpop.xlane.xlu1 %1388 }
 0x43f   : > { %v1395_v30 = vsub.f32 %v1330_v3, %v1389_v28 }
 0x441   : > { %v1401_v32 = vmul.f32 1.442695, %v1395_v30 }
 0x442   : > { %v1392_v29 = vpop.xlane.xlu1 %1391 }
 0x443   : > { %v1396_v31 = vsub.f32 %v1376_v7, %v1392_v29  ;;  %4130 = vpow2.f32 %v1401_v32 }
 0x445   : > { %v4517_v24 = vpop.eup %4126  ;;  %v1403_v33 = vmul.f32 1.442695, %v1396_v31 }
 0x446   : > { %v1405_v26 = vsel %vm1196_vm2, %v4517_v24, 0.0  ;;  %v1032_v38 = vpop.permute.xlu1 %1031 }
 0x447   : > { %v4521_v27 = vpop.eup %4128  ;;  %1406 = vadd.xlane.f32.xlu0 %v1405_v26  ;;  %4132 = vpow2.f32 %v1403_v33  ;;  %v1049_v39 = vrot.slane %v1032_v38, %v4439_v46 }
 0x448   : > { %v1408_v25 = vsel %vm1196_vm2, %v4521_v27, 0.0 }
 0x449   : > { %1409 = vadd.xlane.f32.xlu1 %v1408_v25  ;;  %v1050_v41 = vcombine.low %v1041_v40, %v1049_v39  ;;  %v1051_v43 = vcombine.high %v1041_v40, %v1049_v39 }
 0x44b   : > { %v1058_v45 = vrot.slane %v1050_v41, %v4442_v50  ;;  %v1065_v48 = vrot.slane %v1051_v43, %v4442_v50 }
 0x44d   : > { %v4527_v34 = vpop.eup %4130  ;;  %v1066_v53 = vcombine.high %v1058_v45, %v4239_v59  ;;  %v1067_v56 = vcombine.high %v1065_v48, %v4239_v59  ;;  %v1106_v60 = vshrl.u32 %v1058_v45, 16  ;;  %v1122_v62 = vshrl.u32 %v1065_v48, 16 }
 0x44e   : > { %v1411_v36 = vsel %vm1196_vm2, %v4527_v34, 0.0 }
 0x44f   : > { %v1114_v61 = vshrl.u32 %v1066_v53, 16  ;;  %v1130_v3 = vshrl.u32 %v1067_v56, 16 }
 0x451   : > { %v4529_v35 = vpop.eup %4132 }
 0x452   : > { %v1414_v37 = vsel %vm1196_vm2, %v4529_v35, 0.0 }
 0x45a   : > { %1033 = vrot.lane.b32.xlu1 %v1027_v15, %s4993_s0  ;;  %s5007_s0 = smov 120  }
 0x45d   : > { %1029 = vrot.lane.b32.xlu0 %v1027_v15, %s4995_s15  ;;  %s5008_s15 = smov 104  }
 0x47c   : > { %1412 = vadd.xlane.f32.xlu0 %v1411_v36 }
 0x47e   : > { %1415 = vadd.xlane.f32.xlu1 %v1414_v37 }
 0x4d4   : > { %v1407_v42 = vpop.xlane.xlu0 %1406 }
 0x4d5   : > { %4134 = vrcp.f32 %v1407_v42 }
 0x4d6   : > { %v1410_v44 = vpop.xlane.xlu1 %1409 }
 0x4d7   : > { %4136 = vrcp.f32 %v1410_v44 }
 0x4d8   : > { %v1030_v47 = vpop.permute.xlu0 %1029 }
 0x4d9   : > { %v1075_v51 = vrot.slane %v1030_v47, %v4439_v46 }
 0x4da   : > { %v1034_v49 = vpop.permute.xlu1 %1033 }
 0x4db   : > { %v1083_v52 = vrot.slane %v1034_v49, %v4439_v46 }
 0x4dd   : > { %v1084_v54 = vcombine.low %v1075_v51, %v1083_v52  ;;  %v1085_v55 = vcombine.high %v1075_v51, %v1083_v52 }
 0x4df   : > { %v1092_v57 = vrot.slane %v1084_v54, %v4442_v50  ;;  %v1099_v58 = vrot.slane %v1085_v55, %v4442_v50  ;;  %v4135_v29 = vpop.eup %4134 }
 0x4e0   : > { %v1421_v36 = vmul.f32 %v4135_v29, %v4517_v24 }
 0x4e1   : > { %v1100_v63 = vcombine.high %v1092_v57, %v4239_v59  ;;  %v1101_v0 = vcombine.high %v1099_v58, %v4239_v59  ;;  %v1104_v1 = vpack.i.b16 %v1092_v57, %v1058_v45  ;;  %v1107_v2 = vshrl.u32 %v1092_v57, 16  ;;  %v4137_v32 = vpop.eup %4136 }
 0x4e2   : > { %v1120_v4 = vpack.i.b16 %v1099_v58, %v1065_v48  ;;  %v1123_v5 = vshrl.u32 %v1099_v58, 16  ;;  %v1422_v41 = vmul.f32 %v4137_v32, %v4521_v27  ;;  %v1425_v49 = vpack.c.bf16 %v1421_v36, %v1421_v36 }
 0x4e3   : > { %v1108_v6 = vpack.i.b16 %v1107_v2, %v1106_v60  ;;  %v1112_v7 = vpack.i.b16 %v1100_v63, %v1066_v53  ;;  %v1115_v8 = vshrl.u32 %v1100_v63, 16  ;;  %v1128_v10 = vpack.i.b16 %v1101_v0, %v1067_v56 }
 0x4e4   : > { %v1124_v11 = vpack.i.b16 %v1123_v5, %v1122_v62  ;;  %v1131_v12 = vshrl.u32 %v1101_v0, 16  ;;  %v1134_v13 = vcombine.low %v1104_v1, %v1120_v4  ;;  %v1426_v52 = vpack.c.bf16 %v1422_v41, %v1422_v41  ;;  %v4102_v62 = vld [vmem:[%s4981_s7] sm:$0xff]  }
 0x4e5   : > { %v1116_v14 = vpack.i.b16 %v1115_v8, %v1114_v61  ;;  %v1142_v15 = vcombine.low %v1112_v7, %v1128_v10 }
 0x4e6   : > { %v1132_v17 = vpack.i.b16 %v1131_v12, %v1130_v3  ;;  %v1159_v19 = vcombine.low %v1108_v6, %v1124_v11  ;;  %v1141_v20 = vrot.slane %v1134_v13, %v4439_v46 }
 0x4e7   : > { %v1149_v21 = vrot.slane %v1142_v15, %v4439_v46 }
 0x4e8   : > { %v1167_v22 = vcombine.low %v1116_v14, %v1132_v17  ;;  %v1166_v26 = vrot.slane %v1159_v19, %v4439_v46 }
 0x4e9   : > { %v1150_v23 = vcombine.low %v1141_v20, %v1149_v21 }
 0x4ea   : > { %v1174_v25 = vrot.slane %v1167_v22, %v4439_v46 }
 0x4eb   : > { %v1157_v28 = vrot.slane %v1150_v23, %v4442_v50 }
 0x4ec   : > { %v1175_v30 = vcombine.low %v1166_v26, %v1174_v25 }
 0x4ed   : > { %v1158_v31 = vcombine.high %v1157_v28, %v4239_v59  ;;  %v1187_v38 = vshrl.u32 %v1157_v28, 16 }
 0x4ee   : > { %v1182_v33 = vrot.slane %v1175_v30, %v4442_v50 }
 0x4ef   : > { %v1193_v42 = vshrl.u32 %v1158_v31, 16 }
 0x4f0   : > { %v1186_v37 = vpack.i.b16 %v1182_v33, %v1157_v28  ;;  %v1188_v39 = vshrl.u32 %v1182_v33, 16  ;;  %v1183_v40 = vcombine.high %v1182_v33, %v4239_v59 }
 0x4f2   : > { %v1434_v43 = vsel %vm1432_vm3, %v1186_v37, 0  ;;  %v1189_v44 = vpack.i.b16 %v1188_v39, %v1187_v38  ;;  %v1192_v45 = vpack.i.b16 %v1183_v40, %v1158_v31  ;;  %v1194_v47 = vshrl.u32 %v1183_v40, 16 }
 0x4f3   : > { %3895 = vmatpush3.bf16.msra.mxu1 %v1434_v43 }
 0x4f4   : > { %v1480_v48 = vsel %vm1432_vm3, %v1189_v44, 0  ;;  %3906 = vmatprep.subr.bf16.mxu1 %v4232_v9  ;;  %v1195_v24 = vpack.i.b16 %v1194_v47, %v1193_v42  ;;  %v1526_v51 = vsel %vm1432_vm3, %v1192_v45, 0 }
 0x4f5   : > { %3901 = vmatpush3.bf16.msra.mxu0 %v1480_v48 }
 0x4f6   : > { %3897 = vmatmul.mubr.msk.bf16.vlgmr.msra.gmra.mrb[16].mxu1 %vm1196_vm2, %v1425_v49  ;;  %3912 = vmatprep.subr.bf16.mxu0 %v4232_v9  ;;  %v1572_v27 = vsel %vm1432_vm3, %v1195_v24, 0 }
 0x4f7   : > { %3907 = vmatpush3.bf16.msra.mxu1 %v1526_v51  ;;  %3908 = vmatprep.mubr.msk.bf16.mxu1 %vm4233_vm1, %v4232_v9 }
 0x4f8   : > { %3903 = vmatmul.mubr.msk.bf16.vlgmr.msra.gmra.mrb[12].mxu0 %vm1196_vm2, %v1426_v52  ;;  %3918 = vmatprep.subr.bf16.mxu1 %v4232_v9 }
 0x4f9   : > { %3913 = vmatpush3.bf16.msra.mxu0 %v1572_v27  ;;  %3914 = vmatprep.mubr.msk.bf16.mxu0 %vm4233_vm1, %v4232_v9 }
 0x4fa   : > { %3926 = vmatprep.subr.bf16.mxu0 %v4232_v9 }
 0x509   : > { %v1413_v53 = vpop.xlane.xlu0 %1412 }
 0x50a   : > { %4138 = vrcp.f32 %v1413_v53 }
 0x50b   : > { %v1416_v54 = vpop.xlane.xlu1 %1415 }
 0x50c   : > { %4140 = vrcp.f32 %v1416_v54 }
 0x514   : > { %v4139_v55 = vpop.eup %4138 }
 0x515   : > { %v1423_v56 = vmul.f32 %v4139_v55, %v4527_v34 }
 0x516   : > { %v4141_v57 = vpop.eup %4140 }
 0x517   : > { %v1424_v58 = vmul.f32 %v4141_v57, %v4529_v35  ;;  %v1427_v60 = vpack.c.bf16 %v1423_v56, %v1423_v56 }
 0x519   : > { %3909 = vmatmul.mubr.msk.bf16.vlgmr.msra.gmra.mrb[20].mxu1 %vm1196_vm2, %v1427_v60  ;;  %v1428_v61 = vpack.c.bf16 %v1424_v58, %v1424_v58 }
 0x51a   : > { %3922 = vmatprep.mubr.msk.bf16.mxu1 %vm4233_vm1, %v4232_v9  ;;  %3919 = vmatpush3.bf16.msra.mxu1 %v4102_v62 }
 0x51b   : > { %3915 = vmatmul.mubr.msk.bf16.vlgmr.msra.gmra.mrb[16].mxu0 %vm1196_vm2, %v1428_v61  ;;  %3920 = vmatprep.subr.bf16.mxu1 %v4232_v9 }
 0x51c   : > { %3930 = vmatprep.mubr.msk.bf16.mxu0 %vm4233_vm1, %v4232_v9 }
 0x5c9   : > { %v1470_v34 = vpop.f32.mrb[16].mxu1 }
 0x5ca   : > { %v3898_v35 = vpop.f32.mrb[17].mxu1  ;;  %v1614_v5 = vpack.c.bf16 %v1470_v34, %v1470_v34  ;;  %v4103_v34 = vld [vmem:[%s4981_s7 + $0x8] sm:$0xff]  }
 0x5cb   : > { %v1473_v63 = vpop.f32.mrb[18].mxu1  ;;  %v1516_v0 = vpop.f32.mrb[12].mxu0  ;;  %3921 = vmatpush3.bf16.msra.mxu1 %v4103_v34 }
 0x5cc   : > { %v3899_v1 = vpop.f32.mrb[19].mxu1  ;;  %v3904_v2 = vpop.f32.mrb[13].mxu0  ;;  %v1648_v7 = vpack.c.bf16 %v1516_v0, %v1516_v0  ;;  %v1621_v13 = vrot.slane %v1614_v5, %v4439_v46  ;;  %3934 = vmatprep.subr.bf16.mxu1 %v4232_v9 }
 0x5cd   : > { %v1519_v3 = vpop.f32.mrb[14].mxu0 }
 0x5ce   : > { %v3905_v4 = vpop.f32.mrb[15].mxu0  ;;  %v1655_v21 = vrot.slane %v1648_v7, %v4439_v46 }
 0x5ec   : > { %v1562_v6 = vpop.f32.mrb[20].mxu1 }
 0x5ed   : > { %v1622_v8 = vpack.c.bf16 %v1562_v6, %v1562_v6  ;;  %v3910_v10 = vpop.f32.mrb[21].mxu1 }
 0x5ee   : > { %v1565_v11 = vpop.f32.mrb[22].mxu1  ;;  %v1608_v12 = vpop.f32.mrb[16].mxu0 }
 0x5ef   : > { %v1629_v14 = vrot.slane %v1622_v8, %v4439_v46  ;;  %v1656_v15 = vpack.c.bf16 %v1608_v12, %v1608_v12  ;;  %v3911_v17 = vpop.f32.mrb[23].mxu1  ;;  %v3916_v19 = vpop.f32.mrb[17].mxu0 }
 0x5f0   : > { %v1611_v20 = vpop.f32.mrb[18].mxu0 }
 0x5f1   : > { %v1630_v22 = vcombine.low %v1621_v13, %v1629_v14  ;;  %v1631_v23 = vcombine.high %v1621_v13, %v1629_v14  ;;  %v1663_v26 = vrot.slane %v1656_v15, %v4439_v46  ;;  %v3917_v25 = vpop.f32.mrb[19].mxu0 }
 0x5f3   : > { %v1638_v28 = vrot.slane %v1630_v22, %v4442_v50  ;;  %v1645_v29 = vrot.slane %v1631_v23, %v4442_v50  ;;  %v1664_v30 = vcombine.low %v1655_v21, %v1663_v26  ;;  %v1665_v31 = vcombine.high %v1655_v21, %v1663_v26  ;;  %v4166_v26 = vld [vmem:[%s4375_s18] sm:$0xff] }
 0x5f5   : > { %v1646_v32 = vcombine.high %v1638_v28, %v4239_v59  ;;  %v1672_v33 = vrot.slane %v1664_v30, %v4442_v50  ;;  %v1679_v36 = vrot.slane %v1665_v31, %v4442_v50  ;;  %v1647_v37 = vcombine.high %v1645_v29, %v4239_v59 }
 0x5f6   : > { %v1686_v38 = vshrl.u32 %v1638_v28, 16  ;;  %v1702_v44 = vshrl.u32 %v1645_v29, 16 }
 0x5f7   : > { %v1680_v39 = vcombine.high %v1672_v33, %v4239_v59  ;;  %v1681_v40 = vcombine.high %v1679_v36, %v4239_v59  ;;  %v1684_v41 = vpack.i.b16 %v1672_v33, %v1638_v28  ;;  %v1687_v42 = vshrl.u32 %v1672_v33, 16 }
 0x5f8   : > { %v1694_v43 = vshrl.u32 %v1646_v32, 16  ;;  %v1700_v45 = vpack.i.b16 %v1679_v36, %v1645_v29  ;;  %v1703_v47 = vshrl.u32 %v1679_v36, 16  ;;  %v1710_v52 = vshrl.u32 %v1647_v37, 16 }
 0x5f9   : > { %v1688_v48 = vpack.i.b16 %v1687_v42, %v1686_v38  ;;  %v1692_v49 = vpack.i.b16 %v1680_v39, %v1646_v32  ;;  %v1695_v24 = vshrl.u32 %v1680_v39, 16  ;;  %v1708_v51 = vpack.i.b16 %v1681_v40, %v1647_v37  ;;  %v4104_v39 = vld [vmem:[%s4982_s8] sm:$0xff]   ;;  %v4107_v42 = vld [vmem:[%s4984_s10 + $0x8] sm:$0xff]  }
 0x5fa   : > { %v1704_v27 = vpack.i.b16 %v1703_v47, %v1702_v44  ;;  %v1711_v53 = vshrl.u32 %v1681_v40, 16  ;;  %v1714_v54 = vcombine.low %v1684_v41, %v1700_v45  ;;  %3927 = vmatpush3.bf16.msra.mxu0 %v4104_v39  ;;  %v4105_v40 = vld [vmem:[%s4982_s8 + $0x8] sm:$0xff]   ;;  %v4106_v41 = vld [vmem:[%s4984_s10] sm:$0xff]  }
 0x5fb   : > { %v1696_v55 = vpack.i.b16 %v1695_v24, %v1694_v43  ;;  %v1722_v56 = vcombine.low %v1692_v49, %v1708_v51  ;;  %3928 = vmatprep.subr.bf16.mxu0 %v4232_v9 }
 0x5fc   : > { %v1712_v57 = vpack.i.b16 %v1711_v53, %v1710_v52  ;;  %v1739_v58 = vcombine.low %v1688_v48, %v1704_v27  ;;  %v1721_v60 = vrot.slane %v1714_v54, %v4439_v46  ;;  %v4108_v52 = vld [vmem:[%s4984_s10 + $0x10] sm:$0xff]   ;;  %v4109_v27 = vld [vmem:[%s4984_s10 + $0x18] sm:$0xff]  }
 0x5fd   : > { %v1729_v61 = vrot.slane %v1722_v56, %v4439_v46 }
 0x5fe   : > { %v1747_v62 = vcombine.low %v1696_v55, %v1712_v57  ;;  %v1746_v63 = vrot.slane %v1739_v58, %v4439_v46  ;;  %3929 = vmatpush3.bf16.msra.mxu0 %v4105_v40 }
 0x5ff   : > { %v1730_v35 = vcombine.low %v1721_v60, %v1729_v61  ;;  %3946 = vmatprep.subr.bf16.mxu0 %v4232_v9  ;;  %v3698_v60 = vld [vmem:[%s4985_s11] ss:$0 sm:$0xff] }
 0x600   : > { %v1754_v0 = vrot.slane %v1747_v62, %v4439_v46 }
 0x601   : > { %v1737_v1 = vrot.slane %v1730_v35, %v4442_v50 }
 0x602   : > { %v1755_v2 = vcombine.low %v1746_v63, %v1754_v0 }
 0x603   : > { %v1738_v4 = vcombine.high %v1737_v1, %v4239_v59  ;;  %v1767_v5 = vshrl.u32 %v1737_v1, 16 }
 0x604   : > { %v1762_v3 = vrot.slane %v1755_v2, %v4442_v50 }
 0x605   : > { %v1773_v12 = vshrl.u32 %v1738_v4, 16 }
 0x606   : > { %v1768_v6 = vshrl.u32 %v1762_v3, 16  ;;  %v1763_v7 = vcombine.high %v1762_v3, %v4239_v59  ;;  %v1766_v8 = vpack.i.b16 %v1762_v3, %v1737_v1 }
 0x608   : > { %v1769_v10 = vpack.i.b16 %v1768_v6, %v1767_v5  ;;  %v1772_v11 = vpack.i.b16 %v1763_v7, %v1738_v4  ;;  %v1774_v13 = vshrl.u32 %v1763_v7, 16  ;;  %v4110_v7 = vld [vmem:[%s4978_s4 + $0x10] sm:$0xff]  }
 0x60a   : > { %1776 = vrot.lane.b32.xlu0 %v1769_v10, %s4992_s21  ;;  %1778 = vrot.lane.b32.xlu1 %v1772_v11, %s4991_s25  ;;  %v1775_v14 = vpack.i.b16 %v1774_v13, %v1773_v12  ;;  %v4112_v10 = vld [vmem:[%s4978_s4 + $0x18] sm:$0xff]   ;;  %s467_s25 = sand.u32 1, %s4222_s30  }
 0x60b   : > { %v4113_v11 = vld [vmem:[%s4980_s6 + $0x18] sm:$0xff]  }
 0x60e   : > { %1780 = vrot.lane.b32.xlu0 %v1775_v14, %s4990_s26  ;;  %s5009_s26 = smov 8  }
 0x67c   : > { %v1777_v15 = vpop.permute.xlu0 %1776  ;;  %v1779_v19 = vpop.permute.xlu1 %1778 }
 0x67d   : > { %v1784_v17 = vsel %vm1196_vm2, %v1766_v8, %v1777_v15  ;;  %v4111_v8 = vld [vmem:[%s4980_s6 + $0x10] sm:$0xff]  }
 0x67e   : > { %v1787_v20 = vsel %vm1785_vm4, %v1784_v17, %v1779_v19  ;;  %v4682_v17 = vld [vmem:[%s5005_s2 + $0x1] ss:$0 sm:$0xff] }
 0x680   : > { %v1781_v21 = vpop.permute.xlu0 %1780 }
 0x681   : > { %v1790_v22 = vsel %vm1788_vm5, %v1787_v20, %v1781_v21  ;;  %v4687_v20 = vld [vmem:[%s4977_s3 + $0x1] ss:$0 sm:$0xff] }
 0x682   : > { %3923 = vmatmul.mubr.msk.bf16.vlgmr.msra.gmra.mrb[24].mxu1 %vm488_vm0, %v1790_v22 }
 0x683   : > { %3942 = vmatprep.mubr.msk.bf16.mxu1 %vm4233_vm1, %v4232_v9  ;;  %3935 = vmatpush3.bf16.msra.mxu1 %v4106_v41 }
 0x684   : > { %3936 = vmatprep.subr.bf16.mxu1 %v4232_v9 }
 0x687   : > { %3937 = vmatpush3.bf16.msra.mxu1 %v4107_v42 }
 0x688   : > { %3938 = vmatprep.subr.bf16.mxu1 %v4232_v9 }
 0x68b   : > { %3939 = vmatpush3.bf16.msra.mxu1 %v4108_v52 }
 0x68c   : > { %3940 = vmatprep.subr.bf16.mxu1 %v4232_v9 }
 0x68f   : > { %3941 = vmatpush3.bf16.msra.mxu1 %v4109_v27 }
 0x690   : > { %3962 = vmatprep.subr.bf16.mxu1 %v4232_v9 }
 0x755   : > { %v1843_v23 = vpop.f32.mrb[24].mxu1 }
 0x756   : > { %v1849_v25 = vadd.f32 %v4166_v26, %v1843_v23  ;;  %v3924_v28 = vpop.f32.mrb[25].mxu1  ;;  %v4114_v23 = vld [vmem:[%s4979_s5 + $0x10] sm:$0xff]  }
 0x757   : > { %v1846_v29 = vpop.f32.mrb[26].mxu1 }
 0x758   : > { %v3925_v30 = vpop.f32.mrb[27].mxu1  ;;  %v1850_v31 = vsel %vm488_vm0, %v1849_v25, 0.0 }
 0x759   : > { %1851 = vadd.xlane.f32.xlu1 %v1850_v31 }
 0x7e6   : > { %v1852_v32 = vpop.xlane.xlu1 %1851 }
 0x7e7   : > { %v1853_v33 = vmul.f32 0.03125, %v1852_v32 }
 0x7e9   : > { %v1854_v36 = vsub.f32 %v1849_v25, %v1853_v33 }
 0x7eb   : > { %v1855_v37 = vmul.f32 %v1854_v36, %v1854_v36 }
 0x7ed   : > { %v1856_v38 = vsel %vm488_vm0, %v1855_v37, 0.0 }
 0x7ee   : > { %1857 = vadd.xlane.f32.xlu0 %v1856_v38 }
 0x87b   : > { %v1858_v43 = vpop.xlane.xlu0 %1857 }
 0x87c   : > { %v1859_v44 = vmul.f32 0.03125, %v1858_v43 }
 0x87e   : > { %v1860_v45 = vadd.f32 1e-06, %v1859_v44 }
 0x880   : > { %4142 = vrsqrt.f32 %v1860_v45 }
 0x88a   : > { %v4143_v47 = vpop.eup %4142 }
 0x88b   : > { %v1862_v48 = vmul.f32 %v4143_v47, %v1854_v36 }
 0x88d   : > { %v1863_v49 = vmul.f32 %v4405_v16, %v1862_v48  ;;  %v3694_v16 = vld [vmem:[%s4983_s9] ss:$0 sm:$0xff] }
 0x88f   : > { %v1864_v24 = vadd.f32 %v4410_v18, %v1863_v49 }
 0x891   : > { %v1865_v51 = vpack.c.bf16 %v1864_v24, %v1864_v24 }
 0x893   : > { %3931 = vmatmul.mubr.msk.bf16.vlgmr.msra.gmra.mrb[20].mxu0 %vm488_vm0, %v1865_v51 }
 0x894   : > { %3950 = vmatprep.mubr.msk.bf16.mxu0 %vm4233_vm1, %v4232_v9  ;;  %3947 = vmatpush3.bf16.msra.mxu0 %v4110_v7 }
 0x895   : > { %3948 = vmatprep.subr.bf16.mxu0 %v4232_v9 }
 0x898   : > { %3949 = vmatpush3.bf16.msra.mxu0 %v4112_v10 }
 0x899   : > { %3954 = vmatprep.subr.bf16.mxu0 %v4232_v9 }
 0x966   : > { %v1926_v18 = vpop.f32.mrb[20].mxu0 }
 0x967   : > { %v1927_v53 = vadd.f32 %v3694_v16, %v1926_v18  ;;  %v3932_v54 = vpop.f32.mrb[21].mxu0 }
 0x968   : > { %v1929_v55 = vpop.f32.mrb[22].mxu0 }
 0x969   : > { %v1932_v56 = vmax.f32 %v1927_v53, 0.0  ;;  %v3933_v57 = vpop.f32.mrb[23].mxu0 }
 0x96b   : > { %v1933_v58 = vpack.c.bf16 %v1932_v56, %v1932_v56 }
 0x96d   : > { %3943 = vmatmul.mubr.msk.bf16.vlgmr.msra.gmra.mrb[28].mxu1 %vm1973_vm6, %v1933_v58 }
 0x96e   : > { %3966 = vmatprep.mubr.msk.bf16.mxu1 %vm4233_vm1, %v4232_v9  ;;  %3963 = vmatpush3.bf16.msra.mxu1 %v4111_v8 }
 0x96f   : > { %3964 = vmatprep.subr.bf16.mxu1 %v4232_v9 }
 0x972   : > { %3965 = vmatpush3.bf16.msra.mxu1 %v4113_v11 }
 0x973   : > { %3976 = vmatprep.subr.bf16.mxu1 %v4232_v9 }
 0xa40   : > { %v2011_v61 = vpop.f32.mrb[28].mxu1 }
 0xa41   : > { %v2012_v62 = vadd.f32 %v3698_v60, %v2011_v61  ;;  %v3944_v34 = vpop.f32.mrb[29].mxu1 }
 0xa42   : > { %v2014_v35 = vpop.f32.mrb[30].mxu1 }
 0xa43   : > { %v4657_v63 = vadd.f32 %v2012_v62, %v1849_v25  ;;  %v3945_v0 = vpop.f32.mrb[31].mxu1  ;;  %v4115_v25 = vld [vmem:[%s4979_s5 + $0x18] sm:$0xff]  }
 0xa45   : > { %v2022_v1 = vsel %vm488_vm0, %v4657_v63, 0.0 }
 0xa46   : > { %2023 = vadd.xlane.f32.xlu0 %v2022_v1 }
 0xad3   : > { %v2024_v2 = vpop.xlane.xlu0 %2023 }
 0xad4   : > { %v2025_v3 = vmul.f32 0.03125, %v2024_v2 }
 0xad6   : > { %v2026_v4 = vsub.f32 %v4657_v63, %v2025_v3 }
 0xad8   : > { %v2027_v5 = vmul.f32 %v2026_v4, %v2026_v4 }
 0xada   : > { %v2028_v6 = vsel %vm488_vm0, %v2027_v5, 0.0 }
 0xadb   : > { %2029 = vadd.xlane.f32.xlu1 %v2028_v6 }
 0xb68   : > { %v2030_v12 = vpop.xlane.xlu1 %2029 }
 0xb69   : > { %v2031_v13 = vmul.f32 0.03125, %v2030_v12 }
 0xb6b   : > { %v2032_v14 = vadd.f32 1e-06, %v2031_v13 }
 0xb6d   : > { %4144 = vrsqrt.f32 %v2032_v14 }
 0xb77   : > { %v4145_v15 = vpop.eup %4144 }
 0xb78   : > { %v2034_v19 = vmul.f32 %v4145_v15, %v2026_v4 }
 0xb7a   : > { %v2041_v21 = vmul.f32 %v4682_v17, %v2034_v19 }
 0xb7c   : > { %v2048_v22 = vadd.f32 %v4687_v20, %v2041_v21 }
 0xb7e   : > { %v2049_v26 = vpack.c.bf16 %v2048_v22, %v2048_v22 }
 0xb80   : > { %3951 = vmatmul.mubr.msk.bf16.vlgmr.msra.gmra.mrb[24].mxu0 %vm488_vm0, %v2049_v26  ;;  %3967 = vmatmul.mubr.msk.bf16.vlgmr.msra.gmra.mrb[32].mxu1 %vm488_vm0, %v2049_v26 }
 0xb81   : > { %3955 = vmatpush3.bf16.msra.mxu0 %v4114_v23  ;;  %3958 = vmatprep.mubr.msk.bf16.mxu0 %vm4233_vm1, %v4232_v9 }
 0xb82   : > { %3956 = vmatprep.subr.bf16.mxu0 %v4232_v9  ;;  %3978 = vmatprep.mubr.msk.bf16.mxu1 %vm4233_vm1, %v4232_v9 }
 0xb85   : > { %3957 = vmatpush3.bf16.msra.mxu0 %v4115_v25 }
 0xb86   : > { %3970 = vmatprep.subr.bf16.mxu0 %v4232_v9 }
 0xb88   : > { %3959 = vmatmul.mubr.msk.bf16.vlgmr.msra.gmra.mrb[28].mxu0 %vm488_vm0, %v2049_v26 }
 0xb89   : > { %3972 = vmatprep.mubr.msk.bf16.mxu0 %vm4233_vm1, %v4232_v9 }
 0xc53   : > { %v2104_v28 = vpop.f32.mrb[24].mxu0  ;;  %v4708_v29 = vpop.f32.mrb[32].mxu1 }
 0xc54   : > { %v3952_v30 = vpop.f32.mrb[25].mxu0  ;;  %v3968_v31 = vpop.f32.mrb[33].mxu1  ;;  %v2224_v43 = vpack.c.bf16 %v2104_v28, %v2104_v28 }
 0xc55   : > { %v2107_v32 = vpop.f32.mrb[26].mxu0  ;;  %v2221_v33 = vpop.f32.mrb[34].mxu1 }
 0xc56   : > { %v3953_v36 = vpop.f32.mrb[27].mxu0  ;;  %v3969_v37 = vpop.f32.mrb[35].mxu1  ;;  %v2238_v60 = vrot.slane %v2224_v43, %v4439_v46 }
 0xc5b   : > { %v2161_v38 = vpop.f32.mrb[28].mxu0 }
 0xc5c   : > { %v2393_v39 = vpack.c.bf16 %v2161_v38, %v2161_v38  ;;  %v3960_v40 = vpop.f32.mrb[29].mxu0 }
 0xc5d   : > { %v2164_v41 = vpop.f32.mrb[30].mxu0 }
 0xc5e   : > { %2397 = vrot.lane.b32.xlu1 %v2393_v39, %s4236_s22  ;;  %2395 = vrot.lane.b32.xlu0 %v2393_v39, %s5007_s0  ;;  %v3961_v42 = vpop.f32.mrb[31].mxu0  ;;  %v2407_v47 = vrot.slane %v2393_v39, %v4439_v46 }
 0xc62   : > { %2399 = vrot.lane.b32.xlu1 %v2393_v39, %s5008_s15  ;;  %2226 = vrot.lane.b32.xlu0 %v2224_v43, %s5007_s0 }
 0xc66   : > { %2228 = vrot.lane.b32.xlu1 %v2224_v43, %s4236_s22  ;;  %2230 = vrot.lane.b32.xlu0 %v2224_v43, %s5008_s15 }
 0xcd0   : > { %v2398_v44 = vpop.permute.xlu1 %2397  ;;  %v2396_v45 = vpop.permute.xlu0 %2395 }
 0xcd1   : > { %v2415_v48 = vrot.slane %v2398_v44, %v4439_v46  ;;  %v2441_v53 = vrot.slane %v2396_v45, %v4439_v46 }
 0xcd3   : > { %v2416_v49 = vcombine.low %v2407_v47, %v2415_v48  ;;  %v2417_v24 = vcombine.high %v2407_v47, %v2415_v48 }
 0xcd4   : > { %v2400_v51 = vpop.permute.xlu1 %2399  ;;  %v2227_v52 = vpop.permute.xlu0 %2226 }
 0xcd5   : > { %v2424_v27 = vrot.slane %v2416_v49, %v4442_v50  ;;  %v2431_v16 = vrot.slane %v2417_v24, %v4442_v50  ;;  %v2449_v18 = vrot.slane %v2400_v51, %v4439_v46  ;;  %v2272_v58 = vrot.slane %v2227_v52, %v4439_v46 }
 0xcd7   : > { %v2432_v54 = vcombine.high %v2424_v27, %v4239_v59  ;;  %v2433_v55 = vcombine.high %v2431_v16, %v4239_v59  ;;  %v2450_v56 = vcombine.low %v2441_v53, %v2449_v18  ;;  %v2451_v57 = vcombine.high %v2441_v53, %v2449_v18 }
 0xcd8   : > { %v2229_v61 = vpop.permute.xlu1 %2228  ;;  %v2231_v62 = vpop.permute.xlu0 %2230  ;;  %v2472_v34 = vshrl.u32 %v2424_v27, 16  ;;  %v2488_v35 = vshrl.u32 %v2431_v16, 16 }
 0xcd9   : > { %v2246_v0 = vrot.slane %v2229_v61, %v4439_v46  ;;  %v2280_v1 = vrot.slane %v2231_v62, %v4439_v46  ;;  %v2480_v2 = vshrl.u32 %v2432_v54, 16  ;;  %v2496_v3 = vshrl.u32 %v2433_v55, 16 }
 0xcda   : > { %v2458_v4 = vrot.slane %v2450_v56, %v4442_v50  ;;  %v2465_v5 = vrot.slane %v2451_v57, %v4442_v50 }
 0xcdb   : > { %v2247_v6 = vcombine.low %v2238_v60, %v2246_v0  ;;  %v2248_v7 = vcombine.high %v2238_v60, %v2246_v0  ;;  %v2281_v8 = vcombine.low %v2272_v58, %v2280_v1  ;;  %v2282_v10 = vcombine.high %v2272_v58, %v2280_v1 }
 0xcdc   : > { %v2466_v11 = vcombine.high %v2458_v4, %v4239_v59  ;;  %v2467_v12 = vcombine.high %v2465_v5, %v4239_v59  ;;  %v2470_v13 = vpack.i.b16 %v2458_v4, %v2424_v27  ;;  %v2473_v14 = vshrl.u32 %v2458_v4, 16 }
 0xcdd   : > { %v2486_v15 = vpack.i.b16 %v2465_v5, %v2431_v16  ;;  %v2489_v19 = vshrl.u32 %v2465_v5, 16  ;;  %v2255_v21 = vrot.slane %v2247_v6, %v4442_v50  ;;  %v2262_v22 = vrot.slane %v2248_v7, %v4442_v50 }
 0xcde   : > { %v2474_v23 = vpack.i.b16 %v2473_v14, %v2472_v34  ;;  %v2478_v26 = vpack.i.b16 %v2466_v11, %v2432_v54  ;;  %v2481_v25 = vshrl.u32 %v2466_v11, 16  ;;  %v2494_v28 = vpack.i.b16 %v2467_v12, %v2433_v55 }
 0xcdf   : > { %v2490_v30 = vpack.i.b16 %v2489_v19, %v2488_v35  ;;  %v2497_v31 = vshrl.u32 %v2467_v12, 16  ;;  %v2500_v32 = vcombine.low %v2470_v13, %v2486_v15  ;;  %v2263_v33 = vcombine.high %v2255_v21, %v4239_v59 }
 0xce0   : > { %v2482_v36 = vpack.i.b16 %v2481_v25, %v2480_v2  ;;  %v2508_v37 = vcombine.low %v2478_v26, %v2494_v28  ;;  %v2264_v38 = vcombine.high %v2262_v22, %v4239_v59  ;;  %v2303_v42 = vshrl.u32 %v2255_v21, 16 }
 0xce1   : > { %v2498_v39 = vpack.i.b16 %v2497_v31, %v2496_v3  ;;  %v2507_v40 = vrot.slane %v2500_v32, %v4439_v46  ;;  %v2525_v41 = vcombine.low %v2474_v23, %v2490_v30  ;;  %v2311_v43 = vshrl.u32 %v2263_v33, 16 }
 0xce2   : > { %v2319_v44 = vshrl.u32 %v2262_v22, 16  ;;  %v2289_v45 = vrot.slane %v2281_v8, %v4442_v50  ;;  %v2296_v47 = vrot.slane %v2282_v10, %v4442_v50  ;;  %v2327_v49 = vshrl.u32 %v2264_v38, 16 }
 0xce3   : > { %v2533_v48 = vcombine.low %v2482_v36, %v2498_v39  ;;  %v2515_v24 = vrot.slane %v2508_v37, %v4439_v46  ;;  %v2532_v51 = vrot.slane %v2525_v41, %v4439_v46 }
 0xce4   : > { %v2297_v52 = vcombine.high %v2289_v45, %v4239_v59  ;;  %v2298_v27 = vcombine.high %v2296_v47, %v4239_v59  ;;  %v2301_v16 = vpack.i.b16 %v2289_v45, %v2255_v21  ;;  %v2304_v18 = vshrl.u32 %v2289_v45, 16 }
 0xce5   : > { %v2317_v53 = vpack.i.b16 %v2296_v47, %v2262_v22  ;;  %v2320_v54 = vshrl.u32 %v2296_v47, 16  ;;  %v2516_v55 = vcombine.low %v2507_v40, %v2515_v24  ;;  %v2540_v56 = vrot.slane %v2533_v48, %v4439_v46 }
 0xce6   : > { %v2305_v57 = vpack.i.b16 %v2304_v18, %v2303_v42  ;;  %v2309_v58 = vpack.i.b16 %v2297_v52, %v2263_v33  ;;  %v2312_v60 = vshrl.u32 %v2297_v52, 16  ;;  %v2325_v61 = vpack.i.b16 %v2298_v27, %v2264_v38  ;;  %v4167_v52 = vld [vmem:[%s4507_s27] ss:$0 sm:$0xff] }
 0xce7   : > { %v2321_v62 = vpack.i.b16 %v2320_v54, %v2319_v44  ;;  %v2328_v34 = vshrl.u32 %v2298_v27, 16  ;;  %v2331_v35 = vcombine.low %v2301_v16, %v2317_v53  ;;  %v2523_v0 = vrot.slane %v2516_v55, %v4442_v50 }
 0xce8   : > { %v2313_v1 = vpack.i.b16 %v2312_v60, %v2311_v43  ;;  %v2339_v2 = vcombine.low %v2309_v58, %v2325_v61  ;;  %v2541_v3 = vcombine.low %v2532_v51, %v2540_v56 }
 0xce9   : > { %v2329_v4 = vpack.i.b16 %v2328_v34, %v2327_v49  ;;  %v2356_v5 = vcombine.low %v2305_v57, %v2321_v62  ;;  %v2338_v6 = vrot.slane %v2331_v35, %v4439_v46  ;;  %v2553_v11 = vshrl.u32 %v2523_v0, 16 }
 0xcea   : > { %v2346_v7 = vrot.slane %v2339_v2, %v4439_v46  ;;  %v2548_v8 = vrot.slane %v2541_v3, %v4442_v50  ;;  %v2524_v26 = vcombine.high %v2523_v0, %v4239_v59 }
 0xceb   : > { %v2364_v10 = vcombine.low %v2313_v1, %v2329_v4  ;;  %v2363_v19 = vrot.slane %v2356_v5, %v4439_v46 }
 0xcec   : > { %v2347_v12 = vcombine.low %v2338_v6, %v2346_v7  ;;  %v2552_v13 = vpack.i.b16 %v2548_v8, %v2523_v0  ;;  %v2554_v14 = vshrl.u32 %v2548_v8, 16  ;;  %v2549_v15 = vcombine.high %v2548_v8, %v4239_v59 }
 0xced   : > { %v2371_v21 = vrot.slane %v2364_v10, %v4439_v46  ;;  %v2559_v36 = vshrl.u32 %v2524_v26, 16  ;;  %v2562_v10 = vpack.c.bf16 %v4708_v29, %v4708_v29 }
 0xcee   : > { %v2735_v22 = vsel %vm1196_vm2, %v2552_v13, 0  ;;  %v2555_v23 = vpack.i.b16 %v2554_v14, %v2553_v11  ;;  %v2354_v30 = vrot.slane %v2347_v12, %v4442_v50  ;;  %v2560_v31 = vshrl.u32 %v2549_v15, 16 }
 0xcef   : > { %v2372_v25 = vcombine.low %v2363_v19, %v2371_v21  ;;  %3971 = vmatpush3.bf16.xpose.msra.mxu0 %v2735_v22  ;;  %v2558_v33 = vpack.i.b16 %v2549_v15, %v2524_v26 }
 0xcf0   : > { %v2781_v28 = vsel %vm1196_vm2, %v2555_v23, 0  ;;  %3982 = vmatprep.subr.bf16.mxu0 %v4232_v9  ;;  %v2384_v39 = vshrl.u32 %v2354_v30, 16  ;;  %v2561_v40 = vpack.i.b16 %v2560_v31, %v2559_v36  ;;  %v2355_v45 = vcombine.high %v2354_v30, %v4239_v59 }
 0xcf1   : > { %3977 = vmatpush3.bf16.xpose.msra.mxu1 %v2781_v28  ;;  %v2379_v32 = vrot.slane %v2372_v25, %v4442_v50  ;;  %v2827_v41 = vsel %vm1196_vm2, %v2558_v33, 0 }
 0xcf2   : > { %3988 = vmatprep.subr.bf16.mxu1 %v4232_v9  ;;  %v2873_v44 = vsel %vm1196_vm2, %v2561_v40, 0  ;;  %v2390_v49 = vshrl.u32 %v2355_v45, 16 }
 0xcf3   : > { %v2385_v37 = vshrl.u32 %v2379_v32, 16  ;;  %v2383_v38 = vpack.i.b16 %v2379_v32, %v2354_v30  ;;  %v2380_v43 = vcombine.high %v2379_v32, %v4239_v59 }
 0xcf5   : > { %v2386_v42 = vpack.i.b16 %v2385_v37, %v2384_v39  ;;  %v2391_v47 = vshrl.u32 %v2380_v43, 16  ;;  %v2389_v48 = vpack.i.b16 %v2380_v43, %v2355_v45 }
 0xcf6   : > { %3973 = vmatmul.mubr.msk.bf16.vlgmr.msra.gmra.mrb[32].mxu0 %vm1196_vm2, %v2383_v38 }
 0xcf7   : > { %3983 = vmatpush3.bf16.xpose.msra.mxu0 %v2827_v41  ;;  %3984 = vmatprep.mubr.msk.bf16.mxu0 %vm4233_vm1, %v4232_v9  ;;  %v2392_v24 = vpack.i.b16 %v2391_v47, %v2390_v49  ;;  %v2576_v41 = vrot.slane %v2562_v10, %v4439_v46 }
 0xcf8   : > { %3979 = vmatmul.mubr.msk.bf16.vlgmr.msra.gmra.mrb[36].mxu1 %vm1196_vm2, %v2386_v42  ;;  %3994 = vmatprep.subr.bf16.mxu0 %v4232_v9 }
 0xcf9   : > { %3989 = vmatpush3.bf16.xpose.msra.mxu1 %v2873_v44  ;;  %3990 = vmatprep.mubr.msk.bf16.mxu1 %vm4233_vm1, %v4232_v9 }
 0xcfa   : > { %4000 = vmatprep.subr.bf16.mxu1 %v4232_v9 }
 0xcfe   : > { %3985 = vmatmul.mubr.msk.bf16.vlgmr.msra.gmra.mrb[36].mxu0 %vm1196_vm2, %v2389_v48 }
 0xcff   : > { %3996 = vmatprep.mubr.msk.bf16.mxu0 %vm4233_vm1, %v4232_v9 }
 0xd00   : > { %3991 = vmatmul.mubr.msk.bf16.vlgmr.msra.gmra.mrb[40].mxu1 %vm1196_vm2, %v2392_v24 }
 0xd01   : > { %4002 = vmatprep.mubr.msk.bf16.mxu1 %vm4233_vm1, %v4232_v9 }
 0xdc9   : > { %v2771_v51 = vpop.f32.mrb[32].mxu0 }
 0xdca   : > { %v2772_v27 = vadd.f32 %v4167_v52, %v2771_v51  ;;  %v3974_v16 = vpop.f32.mrb[33].mxu0 }
 0xdcb   : > { %v2774_v18 = vpop.f32.mrb[34].mxu0  ;;  %v2817_v53 = vpop.f32.mrb[36].mxu1 }
 0xdcc   : > { %v2818_v54 = vadd.f32 %v4167_v52, %v2817_v53  ;;  %v3975_v55 = vpop.f32.mrb[35].mxu0  ;;  %v3980_v56 = vpop.f32.mrb[37].mxu1  ;;  %v2915_v57 = vsel %vm1196_vm2, %v2772_v27, -inf }
 0xdcd   : > { %2916 = vmax.xlane.f32.xlu1 %v2915_v57  ;;  %v2820_v58 = vpop.f32.mrb[38].mxu1 }
 0xdce   : > { %v3981_v60 = vpop.f32.mrb[39].mxu1  ;;  %v2918_v61 = vsel %vm1196_vm2, %v2818_v54, -inf }
 0xdcf   : > { %2919 = vmax.xlane.f32.xlu0 %v2918_v61 }
 0xdd1   : > { %v2863_v62 = vpop.f32.mrb[36].mxu0 }
 0xdd2   : > { %v2864_v34 = vadd.f32 %v4167_v52, %v2863_v62  ;;  %v3986_v35 = vpop.f32.mrb[37].mxu0 }
 0xdd3   : > { %v2866_v0 = vpop.f32.mrb[38].mxu0  ;;  %v2909_v1 = vpop.f32.mrb[40].mxu1 }
 0xdd4   : > { %v2910_v2 = vadd.f32 %v4167_v52, %v2909_v1  ;;  %v3987_v3 = vpop.f32.mrb[39].mxu0  ;;  %v3992_v4 = vpop.f32.mrb[41].mxu1  ;;  %v2921_v5 = vsel %vm1196_vm2, %v2864_v34, -inf }
 0xdd5   : > { %2922 = vmax.xlane.f32.xlu0 %v2921_v5  ;;  %v2912_v6 = vpop.f32.mrb[42].mxu1 }
 0xdd6   : > { %v3993_v7 = vpop.f32.mrb[43].mxu1  ;;  %v2924_v8 = vsel %vm1196_vm2, %v2910_v2, -inf }
 0xdd7   : > { %2925 = vmax.xlane.f32.xlu1 %v2924_v8 }
 0xde8   : > { %2566 = vrot.lane.b32.xlu1 %v2562_v10, %s4236_s22 }
 0xe5a   : > { %v2917_v11 = vpop.xlane.xlu1 %2916 }
 0xe5b   : > { %v2927_v12 = vsub.f32 %v2772_v27, %v2917_v11 }
 0xe5c   : > { %v2920_v13 = vpop.xlane.xlu0 %2919 }
 0xe5d   : > { %v2931_v14 = vmul.f32 1.442695, %v2927_v12  ;;  %v2928_v15 = vsub.f32 %v2818_v54, %v2920_v13 }
 0xe5f   : > { %4146 = vpow2.f32 %v2931_v14  ;;  %v2933_v19 = vmul.f32 1.442695, %v2928_v15 }
 0xe61   : > { %4148 = vpow2.f32 %v2933_v19 }
 0xe62   : > { %v2923_v26 = vpop.xlane.xlu0 %2922 }
 0xe63   : > { %v2929_v28 = vsub.f32 %v2864_v34, %v2923_v26 }
 0xe64   : > { %v2926_v25 = vpop.xlane.xlu1 %2925 }
 0xe65   : > { %v2930_v30 = vsub.f32 %v2910_v2, %v2926_v25  ;;  %v2935_v31 = vmul.f32 1.442695, %v2929_v28 }
 0xe67   : > { %v2937_v32 = vmul.f32 1.442695, %v2930_v30  ;;  %4150 = vpow2.f32 %v2935_v31 }
 0xe68   : > { %v2567_v39 = vpop.permute.xlu1 %2566 }
 0xe69   : > { %v4784_v21 = vpop.eup %4146  ;;  %4152 = vpow2.f32 %v2937_v32  ;;  %v2584_v40 = vrot.slane %v2567_v39, %v4439_v46 }
 0xe6a   : > { %v2939_v22 = vsel %vm1196_vm2, %v4784_v21, 0.0 }
 0xe6b   : > { %v4788_v23 = vpop.eup %4148  ;;  %2940 = vadd.xlane.f32.xlu0 %v2939_v22  ;;  %v2585_v42 = vcombine.low %v2576_v41, %v2584_v40  ;;  %v2586_v44 = vcombine.high %v2576_v41, %v2584_v40 }
 0xe6c   : > { %v2942_v29 = vsel %vm1196_vm2, %v4788_v23, 0.0 }
 0xe6d   : > { %2943 = vadd.xlane.f32.xlu1 %v2942_v29  ;;  %v2593_v47 = vrot.slane %v2585_v42, %v4442_v50  ;;  %v2600_v49 = vrot.slane %v2586_v44, %v4442_v50 }
 0xe6f   : > { %v2601_v27 = vcombine.high %v2593_v47, %v4239_v59  ;;  %v2602_v53 = vcombine.high %v2600_v49, %v4239_v59  ;;  %v2641_v56 = vshrl.u32 %v2593_v47, 16  ;;  %v2657_v58 = vshrl.u32 %v2600_v49, 16 }
 0xe71   : > { %v4794_v33 = vpop.eup %4150  ;;  %v2649_v57 = vshrl.u32 %v2601_v27, 16  ;;  %v2665_v35 = vshrl.u32 %v2602_v53, 16 }
 0xe72   : > { %v2945_v37 = vsel %vm1196_vm2, %v4794_v33, 0.0 }
 0xe73   : > { %v4796_v36 = vpop.eup %4152 }
 0xe74   : > { %v2948_v38 = vsel %vm1196_vm2, %v4796_v36, 0.0 }
 0xe7e   : > { %2568 = vrot.lane.b32.xlu1 %v2562_v10, %s5008_s15  ;;  %s3771_s15 = sshll.u32 %s4340_s17, 7  ;;  %s4243_s17 = smov [#allocation2]  }
 0xe7f   : > { %s4931_s2 = scalar_lea.hbm %s4988_s14, %s3771_s15 }
 0xe81   : > { %2564 = vrot.lane.b32.xlu0 %v2562_v10, %s5007_s0 }
 0xea0   : > { %2946 = vadd.xlane.f32.xlu0 %v2945_v37 }
 0xea2   : > { %2949 = vadd.xlane.f32.xlu1 %v2948_v38 }
 0xef8   : > { %v2941_v43 = vpop.xlane.xlu0 %2940 }
 0xef9   : > { %4154 = vrcp.f32 %v2941_v43 }
 0xefa   : > { %v2944_v45 = vpop.xlane.xlu1 %2943 }
 0xefb   : > { %4156 = vrcp.f32 %v2944_v45 }
 0xefc   : > { %v2565_v48 = vpop.permute.xlu0 %2564 }
 0xefd   : > { %v2610_v51 = vrot.slane %v2565_v48, %v4439_v46 }
 0xefe   : > { %v2569_v24 = vpop.permute.xlu1 %2568 }
 0xeff   : > { %v2618_v52 = vrot.slane %v2569_v24, %v4439_v46 }
 0xf01   : > { %v2619_v16 = vcombine.low %v2610_v51, %v2618_v52  ;;  %v2620_v18 = vcombine.high %v2610_v51, %v2618_v52 }
 0xf03   : > { %v2627_v54 = vrot.slane %v2619_v16, %v4442_v50  ;;  %v2634_v55 = vrot.slane %v2620_v18, %v4442_v50  ;;  %v4155_v28 = vpop.eup %4154 }
 0xf04   : > { %v2955_v38 = vmul.f32 %v4155_v28, %v4784_v21 }
 0xf05   : > { %v2635_v60 = vcombine.high %v2627_v54, %v4239_v59  ;;  %v2636_v61 = vcombine.high %v2634_v55, %v4239_v59  ;;  %v2639_v62 = vpack.i.b16 %v2627_v54, %v2593_v47  ;;  %v2642_v34 = vshrl.u32 %v2627_v54, 16  ;;  %v4157_v32 = vpop.eup %4156 }
 0xf06   : > { %v2655_v0 = vpack.i.b16 %v2634_v55, %v2600_v49  ;;  %v2658_v1 = vshrl.u32 %v2634_v55, 16  ;;  %v2956_v43 = vmul.f32 %v4157_v32, %v4788_v23  ;;  %v2959_v51 = vpack.c.bf16 %v2955_v38, %v2955_v38 }
 0xf07   : > { %v2643_v2 = vpack.i.b16 %v2642_v34, %v2641_v56  ;;  %v2647_v3 = vpack.i.b16 %v2635_v60, %v2601_v27  ;;  %v2650_v4 = vshrl.u32 %v2635_v60, 16  ;;  %v2663_v5 = vpack.i.b16 %v2636_v61, %v2602_v53  ;;  %v4116_v60 = vld [vmem:[%s4981_s7 + $0x10] sm:$0xff]  }
 0xf08   : > { %v2659_v6 = vpack.i.b16 %v2658_v1, %v2657_v58  ;;  %v2666_v7 = vshrl.u32 %v2636_v61, 16  ;;  %v2669_v8 = vcombine.low %v2639_v62, %v2655_v0  ;;  %v2960_v27 = vpack.c.bf16 %v2956_v43, %v2956_v43 }
 0xf09   : > { %v2651_v10 = vpack.i.b16 %v2650_v4, %v2649_v57  ;;  %v2677_v11 = vcombine.low %v2647_v3, %v2663_v5 }
 0xf0a   : > { %v2667_v12 = vpack.i.b16 %v2666_v7, %v2665_v35  ;;  %v2694_v13 = vcombine.low %v2643_v2, %v2659_v6  ;;  %v2676_v14 = vrot.slane %v2669_v8, %v4439_v46 }
 0xf0b   : > { %v2684_v15 = vrot.slane %v2677_v11, %v4439_v46 }
 0xf0c   : > { %v2702_v19 = vcombine.low %v2651_v10, %v2667_v12  ;;  %v2701_v29 = vrot.slane %v2694_v13, %v4439_v46 }
 0xf0d   : > { %v2685_v22 = vcombine.low %v2676_v14, %v2684_v15 }
 0xf0e   : > { %v2709_v26 = vrot.slane %v2702_v19, %v4439_v46 }
 0xf0f   : > { %v2692_v25 = vrot.slane %v2685_v22, %v4442_v50 }
 0xf10   : > { %v2710_v30 = vcombine.low %v2701_v29, %v2709_v26 }
 0xf11   : > { %v2693_v31 = vcombine.high %v2692_v25, %v4239_v59  ;;  %v2722_v40 = vshrl.u32 %v2692_v25, 16 }
 0xf12   : > { %v2717_v37 = vrot.slane %v2710_v30, %v4442_v50 }
 0xf13   : > { %v2728_v44 = vshrl.u32 %v2693_v31, 16 }
 0xf14   : > { %v2721_v39 = vpack.i.b16 %v2717_v37, %v2692_v25  ;;  %v2723_v41 = vshrl.u32 %v2717_v37, 16  ;;  %v2718_v42 = vcombine.high %v2717_v37, %v4239_v59 }
 0xf16   : > { %v2967_v45 = vsel %vm1432_vm3, %v2721_v39, 0  ;;  %v2724_v47 = vpack.i.b16 %v2723_v41, %v2722_v40  ;;  %v2727_v48 = vpack.i.b16 %v2718_v42, %v2693_v31  ;;  %v2729_v49 = vshrl.u32 %v2718_v42, 16 }
 0xf17   : > { %3995 = vmatpush3.bf16.msra.mxu0 %v2967_v45 }
 0xf18   : > { %v3013_v24 = vsel %vm1432_vm3, %v2724_v47, 0  ;;  %4006 = vmatprep.subr.bf16.mxu0 %v4232_v9  ;;  %v2730_v21 = vpack.i.b16 %v2729_v49, %v2728_v44  ;;  %v3059_v52 = vsel %vm1432_vm3, %v2727_v48, 0 }
 0xf19   : > { %4001 = vmatpush3.bf16.msra.mxu1 %v3013_v24 }
 0xf1a   : > { %3997 = vmatmul.mubr.msk.bf16.vlgmr.msra.gmra.mrb[40].mxu0 %vm1196_vm2, %v2959_v51  ;;  %4012 = vmatprep.subr.bf16.mxu1 %v4232_v9  ;;  %v3105_v23 = vsel %vm1432_vm3, %v2730_v21, 0 }
 0xf1b   : > { %4007 = vmatpush3.bf16.msra.mxu0 %v3059_v52  ;;  %4008 = vmatprep.mubr.msk.bf16.mxu0 %vm4233_vm1, %v4232_v9 }
 0xf1c   : > { %4003 = vmatmul.mubr.msk.bf16.vlgmr.msra.gmra.mrb[44].mxu1 %vm1196_vm2, %v2960_v27  ;;  %4018 = vmatprep.subr.bf16.mxu0 %v4232_v9 }
 0xf1d   : > { %4013 = vmatpush3.bf16.msra.mxu1 %v3105_v23  ;;  %4014 = vmatprep.mubr.msk.bf16.mxu1 %vm4233_vm1, %v4232_v9 }
 0xf1e   : > { %4026 = vmatprep.subr.bf16.mxu1 %v4232_v9 }
 0xf2d   : > { %v2947_v16 = vpop.xlane.xlu0 %2946 }
 0xf2e   : > { %4158 = vrcp.f32 %v2947_v16 }
 0xf2f   : > { %v2950_v18 = vpop.xlane.xlu1 %2949 }
 0xf30   : > { %4160 = vrcp.f32 %v2950_v18 }
 0xf38   : > { %v4159_v53 = vpop.eup %4158 }
 0xf39   : > { %v2957_v54 = vmul.f32 %v4159_v53, %v4794_v33 }
 0xf3a   : > { %v4161_v55 = vpop.eup %4160 }
 0xf3b   : > { %v2958_v56 = vmul.f32 %v4161_v55, %v4796_v36  ;;  %v2961_v57 = vpack.c.bf16 %v2957_v54, %v2957_v54 }
 0xf3d   : > { %4009 = vmatmul.mubr.msk.bf16.vlgmr.msra.gmra.mrb[44].mxu0 %vm1196_vm2, %v2961_v57  ;;  %v2962_v58 = vpack.c.bf16 %v2958_v56, %v2958_v56 }
 0xf3e   : > { %4022 = vmatprep.mubr.msk.bf16.mxu0 %vm4233_vm1, %v4232_v9  ;;  %4019 = vmatpush3.bf16.msra.mxu0 %v4116_v60 }
 0xf3f   : > { %4015 = vmatmul.mubr.msk.bf16.vlgmr.msra.gmra.mrb[48].mxu1 %vm1196_vm2, %v2962_v58  ;;  %4020 = vmatprep.subr.bf16.mxu0 %v4232_v9 }
 0xf40   : > { %4030 = vmatprep.mubr.msk.bf16.mxu1 %vm4233_vm1, %v4232_v9 }
 0xfed   : > { %v3003_v33 = vpop.f32.mrb[40].mxu0 }
 0xfee   : > { %v3998_v36 = vpop.f32.mrb[41].mxu0  ;;  %v3147_v2 = vpack.c.bf16 %v3003_v33, %v3003_v33 }
 0xfef   : > { %v3006_v61 = vpop.f32.mrb[42].mxu0  ;;  %v3049_v62 = vpop.f32.mrb[44].mxu1  ;;  %v4117_v36 = vld [vmem:[%s4981_s7 + $0x18] sm:$0xff]  }
 0xff0   : > { %v3999_v34 = vpop.f32.mrb[43].mxu0  ;;  %v4004_v35 = vpop.f32.mrb[45].mxu1  ;;  %v3181_v4 = vpack.c.bf16 %v3049_v62, %v3049_v62  ;;  %v3154_v10 = vrot.slane %v3147_v2, %v4439_v46  ;;  %4021 = vmatpush3.bf16.msra.mxu0 %v4117_v36 }
 0xff1   : > { %v3052_v0 = vpop.f32.mrb[46].mxu1  ;;  %4034 = vmatprep.subr.bf16.mxu0 %v4232_v9 }
 0xff2   : > { %v4005_v1 = vpop.f32.mrb[47].mxu1  ;;  %v3188_v19 = vrot.slane %v3181_v4, %v4439_v46 }
0x1010   : > { %v3095_v3 = vpop.f32.mrb[44].mxu0 }
0x1011   : > { %v3155_v5 = vpack.c.bf16 %v3095_v3, %v3095_v3  ;;  %v4010_v6 = vpop.f32.mrb[45].mxu0 }
0x1012   : > { %v3098_v7 = vpop.f32.mrb[46].mxu0  ;;  %v3141_v8 = vpop.f32.mrb[48].mxu1 }
0x1013   : > { %v3162_v11 = vrot.slane %v3155_v5, %v4439_v46  ;;  %v3189_v12 = vpack.c.bf16 %v3141_v8, %v3141_v8  ;;  %v4011_v13 = vpop.f32.mrb[47].mxu0  ;;  %v4016_v14 = vpop.f32.mrb[49].mxu1 }
0x1014   : > { %v3144_v15 = vpop.f32.mrb[50].mxu1 }
0x1015   : > { %v3163_v22 = vcombine.low %v3154_v10, %v3162_v11  ;;  %v3164_v29 = vcombine.high %v3154_v10, %v3162_v11  ;;  %v3196_v26 = vrot.slane %v3189_v12, %v4439_v46  ;;  %v4017_v25 = vpop.f32.mrb[51].mxu1 }
0x1017   : > { %v3171_v28 = vrot.slane %v3163_v22, %v4442_v50  ;;  %v3178_v30 = vrot.slane %v3164_v29, %v4442_v50  ;;  %v3197_v31 = vcombine.low %v3188_v19, %v3196_v26  ;;  %v3198_v32 = vcombine.high %v3188_v19, %v3196_v26 }
0x1019   : > { %v3179_v37 = vcombine.high %v3171_v28, %v4239_v59  ;;  %v3205_v38 = vrot.slane %v3197_v31, %v4442_v50  ;;  %v3212_v39 = vrot.slane %v3198_v32, %v4442_v50  ;;  %v3180_v40 = vcombine.high %v3178_v30, %v4239_v59 }
0x101a   : > { %v3219_v41 = vshrl.u32 %v3171_v28, 16  ;;  %v3235_v48 = vshrl.u32 %v3178_v30, 16 }
0x101b   : > { %v3213_v42 = vcombine.high %v3205_v38, %v4239_v59  ;;  %v3214_v43 = vcombine.high %v3212_v39, %v4239_v59  ;;  %v3217_v44 = vpack.i.b16 %v3205_v38, %v3171_v28  ;;  %v3220_v45 = vshrl.u32 %v3205_v38, 16 }
0x101c   : > { %v3227_v47 = vshrl.u32 %v3179_v37, 16  ;;  %v3233_v49 = vpack.i.b16 %v3212_v39, %v3178_v30  ;;  %v3236_v24 = vshrl.u32 %v3212_v39, 16  ;;  %v3243_v23 = vshrl.u32 %v3180_v40, 16  ;;  %v4118_v39 = vld [vmem:[%s4982_s8 + $0x10] sm:$0xff]  }
0x101d   : > { %v3221_v51 = vpack.i.b16 %v3220_v45, %v3219_v41  ;;  %v3225_v21 = vpack.i.b16 %v3213_v42, %v3179_v37  ;;  %v3228_v52 = vshrl.u32 %v3213_v42, 16  ;;  %v3241_v27 = vpack.i.b16 %v3214_v43, %v3180_v40  ;;  %4027 = vmatpush3.bf16.msra.mxu1 %v4118_v39  ;;  %v4120_v40 = vld [vmem:[%s4984_s10 + $0x20] sm:$0xff]   ;;  %v4121_v41 = vld [vmem:[%s4984_s10 + $0x28] sm:$0xff]  }
0x101e   : > { %v3237_v16 = vpack.i.b16 %v3236_v24, %v3235_v48  ;;  %v3244_v18 = vshrl.u32 %v3214_v43, 16  ;;  %v3247_v53 = vcombine.low %v3217_v44, %v3233_v49  ;;  %4028 = vmatprep.subr.bf16.mxu1 %v4232_v9 }
0x101f   : > { %v3229_v54 = vpack.i.b16 %v3228_v52, %v3227_v47  ;;  %v3255_v55 = vcombine.low %v3225_v21, %v3241_v27  ;;  %v4123_v21 = vld [vmem:[%s4984_s10 + $0x38] sm:$0xff]  }
0x1020   : > { %v3245_v56 = vpack.i.b16 %v3244_v18, %v3243_v23  ;;  %v3272_v57 = vcombine.low %v3221_v51, %v3237_v16  ;;  %v3254_v58 = vrot.slane %v3247_v53, %v4439_v46  ;;  %v4122_v51 = vld [vmem:[%s4984_s10 + $0x30] sm:$0xff]  }
0x1021   : > { %v3262_v60 = vrot.slane %v3255_v55, %v4439_v46 }
0x1022   : > { %v3280_v33 = vcombine.low %v3229_v54, %v3245_v56  ;;  %v3279_v62 = vrot.slane %v3272_v57, %v4439_v46 }
0x1023   : > { %v3263_v61 = vcombine.low %v3254_v58, %v3262_v60 }
0x1024   : > { %v3287_v34 = vrot.slane %v3280_v33, %v4439_v46 }
0x1025   : > { %v3270_v35 = vrot.slane %v3263_v61, %v4442_v50 }
0x1026   : > { %v3288_v0 = vcombine.low %v3279_v62, %v3287_v34 }
0x1027   : > { %v3271_v2 = vcombine.high %v3270_v35, %v4239_v59  ;;  %v3300_v3 = vshrl.u32 %v3270_v35, 16 }
0x1028   : > { %v3295_v1 = vrot.slane %v3288_v0, %v4442_v50 }
0x1029   : > { %v3306_v10 = vshrl.u32 %v3271_v2, 16 }
0x102a   : > { %v3301_v4 = vshrl.u32 %v3295_v1, 16  ;;  %v3296_v5 = vcombine.high %v3295_v1, %v4239_v59  ;;  %v3299_v6 = vpack.i.b16 %v3295_v1, %v3270_v35 }
0x102c   : > { %v3302_v7 = vpack.i.b16 %v3301_v4, %v3300_v3  ;;  %v3305_v8 = vpack.i.b16 %v3296_v5, %v3271_v2  ;;  %v3307_v11 = vshrl.u32 %v3296_v5, 16  ;;  %v3768_v4 = vld [vmem:[%s4986_s12] ss:$0 sm:$0xff] }
0x102e   : > { %3309 = vrot.lane.b32.xlu0 %v3302_v7, %s5009_s26  ;;  %3311 = vrot.lane.b32.xlu1 %v3305_v8, %s5010_s28  ;;  %v3308_v46 = vpack.i.b16 %v3307_v11, %v3306_v10  ;;  %s3669_s26 = sshll.u32 %s467_s25, 3  ;;  %s3584_s28 = scalar_lea.sflag [#allocation3], %s467_s25 }
0x102f   : > { %s469_s22 = scalar_lea.vmem [#allocation2], %s3669_s26  ;;  %s4172_s26 = sshll.u32 %s4243_s17, 4  ;;  %s4173_s26 = int_to_ptr.vmem [resolvable:$false] %s4172_s26 }
0x1030   : > { %s3597_s27 = sshll.u32 %s469_s22, 4  ;;  %s4174_s18 = scalar_lea.vmem %s4173_s26, 256  ;;  %s4933_s27 = int_to_ptr.vmem [resolvable:$true] %s3597_s27 }
0x1031   : > { %p4175_p0 = scmp.lt.s32.totalorder %s4933_s27, %s4173_s26 }
0x1032   : > { %3313 = vrot.lane.b32.xlu0 %v3308_v46, %s5011_s20  ;;  %s4168_s20 = scalar_lea.vmem %s4933_s27, 128 }
0x1033   : > { %p4169_p11 = scmp.ne.s32.totalorder %s4933_s27, %s4168_s20  ;;  %p4176_p1 = scmp.lt.s32.totalorder %s4174_s18, %s4168_s20 }
0x1035   : > { %p4170_p12 = pnand %p4169_p11, %p4357_p5  ;;  %p4177_p2 = por %p4176_p1, %p4175_p0 }
0x1037   : > { %p4171_p13 = pneg %p4170_p12 }
0x1039   : > { %p4178_p3 = pnand %p4177_p2, %p4171_p13 }
0x10a0   : > { %v3310_v12 = vpop.permute.xlu0 %3309  ;;  %v3312_v13 = vpop.permute.xlu1 %3311 }
0x10a1   : > { %v3317_v50 = vsel %vm1196_vm2, %v3299_v6, %v3310_v12  ;;  %v3769_v6 = vld [vmem:[%s4987_s13] ss:$0 sm:$0xff] }
0x10a2   : > { %v3319_v14 = vsel %vm1785_vm4, %v3317_v50, %v3312_v13 }
0x10a4   : > { %v3314_v15 = vpop.permute.xlu0 %3313 }
0x10a5   : > { %v3321_v59 = vsel %vm1788_vm5, %v3319_v14, %v3314_v15 }
0x10a6   : > { %4023 = vmatmul.mubr.msk.bf16.vlgmr.msra.gmra.mrb[48].mxu0 %vm488_vm0, %v3321_v59 }
0x10a7   : > { %4042 = vmatprep.mubr.msk.bf16.mxu0 %vm4233_vm1, %v4232_v9  ;;  %4035 = vmatpush3.bf16.msra.mxu0 %v4120_v40 }
0x10a8   : > { %4036 = vmatprep.subr.bf16.mxu0 %v4232_v9 }
0x10ab   : > { %4037 = vmatpush3.bf16.msra.mxu0 %v4121_v41 }
0x10ac   : > { %4038 = vmatprep.subr.bf16.mxu0 %v4232_v9 }
0x10af   : > { %4039 = vmatpush3.bf16.msra.mxu0 %v4122_v51 }
0x10b0   : > { %4040 = vmatprep.subr.bf16.mxu0 %v4232_v9  ;;  %v3762_v9 = vld [vmem:[%s4985_s11 + $0x1] ss:$0 sm:$0xff] }
0x10b3   : > { %4041 = vmatpush3.bf16.msra.mxu0 %v4123_v21 }
0x1179   : > { %v3375_v19 = vpop.f32.mrb[48].mxu0 }
0x117a   : > { %v3381_v22 = vadd.f32 %v3375_v19, %v4657_v63  ;;  %v4024_v29 = vpop.f32.mrb[49].mxu0  ;;  %v4119_v63 = vld [vmem:[%s4982_s8 + $0x18] sm:$0xff]  }
0x117b   : > { %v3378_v26 = vpop.f32.mrb[50].mxu0  ;;  %4029 = vmatpush3.bf16.msra.mxu1 %v4119_v63 }
0x117c   : > { %v4025_v25 = vpop.f32.mrb[51].mxu0  ;;  %v3382_v28 = vsel %vm488_vm0, %v3381_v22, 0.0 }
0x117d   : > { %3383 = vadd.xlane.f32.xlu1 %v3382_v28 }
0x120a   : > { %v3384_v30 = vpop.xlane.xlu1 %3383 }
0x120b   : > { %v3385_v31 = vmul.f32 0.03125, %v3384_v30 }
0x120d   : > { %v3386_v32 = vsub.f32 %v3381_v22, %v3385_v31 }
0x120f   : > { %v3387_v37 = vmul.f32 %v3386_v32, %v3386_v32 }
0x1211   : > { %v3388_v38 = vsel %vm488_vm0, %v3387_v37, 0.0 }
0x1212   : > { %3389 = vadd.xlane.f32.xlu0 %v3388_v38 }
0x129f   : > { %v3390_v42 = vpop.xlane.xlu0 %3389 }
0x12a0   : > { %v3391_v43 = vmul.f32 0.03125, %v3390_v42 }
0x12a2   : > { %v3392_v44 = vadd.f32 1e-06, %v3391_v43 }
0x12a4   : > { %4162 = vrsqrt.f32 %v3392_v44 }
0x12ae   : > { %v4163_v45 = vpop.eup %4162 }
0x12af   : > { %v3394_v47 = vmul.f32 %v4163_v45, %v3386_v32 }
0x12b1   : > { %v3395_v48 = vmul.f32 %v4682_v17, %v3394_v47  ;;  %v3749_v17 = vld [vmem:[%s4983_s9 + $0x1] ss:$0 sm:$0xff] }
0x12b3   : > { %v3396_v49 = vadd.f32 %v4687_v20, %v3395_v48 }
0x12b5   : > { %v3397_v24 = vpack.c.bf16 %v3396_v49, %v3396_v49 }
0x12b7   : > { %4031 = vmatmul.mubr.msk.bf16.vlgmr.msra.gmra.mrb[52].mxu1 %vm488_vm0, %v3397_v24 }
0x138a   : > { %v3460_v20 = vpop.f32.mrb[52].mxu1 }
0x138b   : > { %v3461_v52 = vadd.f32 %v3749_v17, %v3460_v20  ;;  %v4032_v27 = vpop.f32.mrb[53].mxu1 }
0x138c   : > { %v3463_v23 = vpop.f32.mrb[54].mxu1 }
0x138d   : > { %v3466_v16 = vmax.f32 %v3461_v52, 0.0  ;;  %v4033_v18 = vpop.f32.mrb[55].mxu1 }
0x138f   : > { %v3467_v53 = vpack.c.bf16 %v3466_v16, %v3466_v16 }
0x1391   : > { %4043 = vmatmul.mubr.msk.bf16.vlgmr.msra.gmra.mrb[52].mxu0 %vm1973_vm6, %v3467_v53 }
0x1464   : > { %v3546_v54 = vpop.f32.mrb[52].mxu0 }
0x1465   : > { %v3547_v55 = vadd.f32 %v3762_v9, %v3546_v54  ;;  %v4044_v56 = vpop.f32.mrb[53].mxu0 }
0x1466   : > { %v3549_v57 = vpop.f32.mrb[54].mxu0 }
0x1467   : > { %v4045_v58 = vpop.f32.mrb[55].mxu0  ;;  %v3552_v60 = vadd.f32 %v3547_v55, %v3381_v22 }
0x1469   : > { %v3555_v33 = vsel %vm488_vm0, %v3552_v60, 0.0 }
0x146a   : > { %3556 = vadd.xlane.f32.xlu0 %v3555_v33 }
0x14f7   : > { %v3557_v36 = vpop.xlane.xlu0 %3556 }
0x14f8   : > { %v3558_v61 = vmul.f32 0.03125, %v3557_v36 }
0x14fa   : > { %v3559_v62 = vsub.f32 %v3552_v60, %v3558_v61 }
0x14fc   : > { %v3560_v34 = vmul.f32 %v3559_v62, %v3559_v62 }
0x14fe   : > { %v3561_v35 = vsel %vm488_vm0, %v3560_v34, 0.0 }
0x14ff   : > { %3562 = vadd.xlane.f32.xlu1 %v3561_v35 }
0x158c   : > { %v3563_v0 = vpop.xlane.xlu1 %3562 }
0x158d   : > { %v3564_v1 = vmul.f32 0.03125, %v3563_v0 }
0x158f   : > { %v3565_v2 = vadd.f32 1e-06, %v3564_v1 }
0x1591   : > { %4164 = vrsqrt.f32 %v3565_v2 }
0x159b   : > { %v4165_v3 = vpop.eup %4164 }
0x159c   : > { %v3567_v5 = vmul.f32 %v4165_v3, %v3559_v62 }
0x159e   : > { %v3574_v7 = vmul.f32 %v3768_v4, %v3567_v5 }
0x15a0   : > { %v3581_v8 = vadd.f32 %v3769_v6, %v3574_v7 }
0x15a2   : > { %3582 = vst.msk [vmem:[%s469_s22] sm:$0xff] %vm488_vm0, %v3581_v8 }
0x15a3   : > { %4181 = shalt.err (!%p4178_p3)
}
0x15a4   : > { %s4182_s1 = scalar_lea.hbm %s4931_s2, 128  ;;  %s4186_s15 = scalar_lea.hbm %s4988_s14, 256 }
0x15a5   : > { %p4183_p4 = scmp.ne.s32.totalorder %s4931_s2, %s4182_s1  ;;  %p4187_p9 = scmp.lt.u32.totalorder %s4931_s2, %s4988_s14 }
0x15a6   : > { %p4188_p10 = scmp.lt.u32.totalorder %s4186_s15, %s4182_s1  ;;  %p4190_p12 = scmp.lt.u32.totalorder %s4182_s1, %s4931_s2 }
0x15a7   : > { %p4184_p7 = pnand %p4183_p4, %p4357_p5 }
0x15a8   : > { %p4189_p11 = por %p4188_p10, %p4187_p9 }
0x15a9   : > { %p4185_p8 = pneg %p4184_p7 }
0x15aa   : > { %p4191_p13 = por %p4190_p12, %p4189_p11 }
0x15ac   : > { %p4192_p0 = pnand %p4191_p13, %p4185_p8 }
0x15ae   : > { %4195 = shalt.err (!%p4192_p0)
}
0x15af   : > { %4046 = dma.vmem_to_hbm [thread:$0]  (%p4357_p5), %s4933_s27, 128, %s4931_s2, %s3584_s28  }
0x15b0 PF: > { %p4052_p1 = scmp.ge.s32.totalorder %s4230_s16, 2  ;;  %s3609_s20 = sand.u32 1, %s4218_s29  }
0x15b1   : > { %s3610_s17 = scalar_lea.sflag [#allocation3], %s3609_s20 }
0x15b2   : > { %p4049_p2 = pnand %p4052_p1, %p4361_p6 }
0x15b4   : > { %4213 = dma.done.wait (!%p4049_p2), %s3610_s17, 128  }
0x15b5   : > { %4215 = vsyncadd (!%p4049_p2), %s3610_s17, 4294967168  ;;  %s5012_s26 = sld [smem:[#allocation5_spill]]  ;;  %s5013_s15 = sld [smem:[#allocation6_spill]] }
0x15b6   : > { %p24_p3 = scmp.ge.s32.totalorder %s4344_s19, 4   ;;  %s5014_s29 = smov %s4222_s30 }
0x15b7   : > { %s5016_s16 = smov %s4344_s19 }
0x15b8   :  { %26 = sbr.rel (!%p24_p3) target bundleno = 7 (0x7), region = 124 }
0x15bb   : > { %s5015_s30 = smov %s5012_s26 }
0x15bf   :  { %3615 = vsyncpa [#allocation3], 1 }
0x15c0   :  { %3617 = vsyncpa [#allocation3 + $0x1], 1 }

</bundles_post_ra>
